<compile_context>
chip_gen: v7x
topology: tpu7x:2x2x1
jax: 0.10.0
libtpu: 0.0.40
codegen_flags: <defaults>
</compile_context>

<pallas_src>
import jax
import jax.numpy as jnp
from jax.experimental import pallas as pl
from jax.experimental.pallas import tpu as pltpu

# Match the kernel's f32 MXU accumulation in the plain-JAX reference / folding.
jax.config.update("jax_default_matmul_precision", "highest")

# ----------------------------- model dimensions ------------------------------
BATCH = 2
IMG_C, IMG_H, IMG_W = 3, 16, 16
SEQ = 8
VOCAB = 100

EMBED_DIM = 32              # stand-in for CLIP projection_dim
PROJ_DIM = 32               # config['projection_dim']
FUSION_DIM = 4 * PROJ_DIM   # [img, txt, attended_img, attended_txt]
CNN_RATIO = 0.5
CNN_OUT = int(FUSION_DIM * CNN_RATIO)   # 64
HIDDEN = 64                 # classifier_hidden_layers = [64]
NUM_CLASSES = 5

# (8,128)-aligned padded tile sizes used inside the kernel
PAD_M = 8                   # batch rows padded to one sublane group
PAD_N = 128                 # all feature dims padded to one full lane group
N_STAGES = 4                # proj -> folded attn+conv -> mlp hidden -> logits


# ------------------------------- Pallas kernel -------------------------------
def fused_head_kernel(x_ref, w_ref, b_ref, out_ref):
    """Fully fused classifier head: 4 chained MXU matmuls on (8,128) tiles.

    x_ref  : (PAD_M, PAD_N)            lanes [0:E) img CLIP feats, [E:2E) txt feats
    w_ref  : (N_STAGES, PAD_N, PAD_N)  packed, zero-padded stage weights
    b_ref  : (PAD_M, PAD_N)            rows 0..3 = stage biases (zero-padded)
    out_ref: (PAD_M, PAD_N)            rows [0:B), lanes [0:NUM_CLASSES) = logits
    """
    f32 = jnp.float32
    x = x_ref[...]
    b = b_ref[...]

    # stage 0: joint image/text projection (block-diag [Wpi | Wpt]) + ReLU
    h = jnp.maximum(jnp.dot(x, w_ref[0], preferred_element_type=f32) + b[0:1, :], 0.0)
    # stage 1: folded cross-attention + Conv1d(kernel_size=1) as one matmul + ReLU
    #   (seq-len 1 => softmax == 1, Q/K projections cancel; Wv@Wo pre-folded
    #    into the 4-way-split conv weight outside the kernel)
    h = jnp.maximum(jnp.dot(h, w_ref[1], preferred_element_type=f32) + b[1:2, :], 0.0)
    # stage 2: classifier hidden Linear + ReLU (dropout = identity in eval)
    h = jnp.maximum(jnp.dot(h, w_ref[2], preferred_element_type=f32) + b[2:3, :], 0.0)
    # stage 3: final Linear -> logits, written as a lane-dense (8,128) tile
    out_ref[...] = jnp.dot(h, w_ref[3], preferred_element_type=f32) + b[3:4, :]


def fused_head(x_pad, w_slab, b_slab):
    return pl.pallas_call(
        fused_head_kernel,
        out_shape=jax.ShapeDtypeStruct((PAD_M, PAD_N), jnp.float32),
        in_specs=[pl.BlockSpec(memory_space=pltpu.MemorySpace.VMEM)] * 3,
        out_specs=pl.BlockSpec(memory_space=pltpu.MemorySpace.VMEM),
    )(x_pad, w_slab, b_slab)


# ------------------------- parameter folding / packing -----------------------
def fold_and_pack_params(p):
    """Fold the linear attention+conv path and pack everything into 2 slabs."""
    P, E = PROJ_DIM, EMBED_DIM

    # seq-len-1 nn.MultiheadAttention (eval): attended = out_proj(value_proj(kv))
    M_i2t = p["wv_i2t"] @ p["wo_i2t"]                      # txt -> attended_img
    c_i2t = p["bv_i2t"] @ p["wo_i2t"] + p["bo_i2t"]        # (1, P)
    M_t2i = p["wv_t2i"] @ p["wo_t2i"]                      # img -> attended_txt
    c_t2i = p["bv_t2i"] @ p["wo_t2i"] + p["bo_t2i"]        # (1, P)

    Wc = p["w_cnn"]                                        # (4P, CNN_OUT)
    Wc_img, Wc_txt = Wc[0:P], Wc[P:2 * P]
    Wc_ai, Wc_at = Wc[2 * P:3 * P], Wc[3 * P:4 * P]
    # concat([img, txt, att_img, att_txt]) @ Wc == img @ A_img + txt @ A_txt + b_fold
    A_img = Wc_img + M_t2i @ Wc_at                         # (P, CNN_OUT)
    A_txt = Wc_txt + M_i2t @ Wc_ai                         # (P, CNN_OUT)
    b_fold = p["b_cnn"] + c_i2t @ Wc_ai + c_t2i @ Wc_at    # (1, CNN_OUT)

    w_slab = jnp.zeros((N_STAGES, PAD_N, PAD_N), jnp.float32)
    b_slab = jnp.zeros((PAD_M, PAD_N), jnp.float32)

    # stage 0: block-diagonal [image_projection | text_projection]
    w_slab = w_slab.at[0, 0:E, 0:P].set(p["w_proj_img"])
    w_slab = w_slab.at[0, E:2 * E, P:2 * P].set(p["w_proj_txt"])
    b_slab = b_slab.at[0, 0:P].set(p["b_proj_img"][0])
    b_slab = b_slab.at[0, P:2 * P].set(p["b_proj_txt"][0])
    # stage 1: folded cross-attention + Conv1d(kernel_size=1)
    w_slab = w_slab.at[1, 0:P, 0:CNN_OUT].set(A_img)
    w_slab = w_slab.at[1, P:2 * P, 0:CNN_OUT].set(A_txt)
    b_slab = b_slab.at[1, 0:CNN_OUT].set(b_fold[0])
    # stage 2: classifier hidden Linear
    w_slab = w_slab.at[2, 0:CNN_OUT, 0:HIDDEN].set(p["w_mlp1"])
    b_slab = b_slab.at[2, 0:HIDDEN].set(p["b_mlp1"][0])
    # stage 3: classifier output Linear
    w_slab = w_slab.at[3, 0:HIDDEN, 0:NUM_CLASSES].set(p["w_mlp2"])
    b_slab = b_slab.at[3, 0:NUM_CLASSES].set(p["b_mlp2"][0])
    return w_slab, b_slab


# ------------------------- parameter initialization --------------------------
def init_params(key):
    def dense(k, fan_in, fan_out):
        kw, kb = jax.random.split(k)
        w = jax.random.normal(kw, (fan_in, fan_out), jnp.float32) * 0.02
        b = jax.random.normal(kb, (1, fan_out), jnp.float32) * 0.02
        return w, b

    keys = jax.random.split(key, 16)
    p = {}
    p["w_proj_img"], p["b_proj_img"] = dense(keys[0], EMBED_DIM, PROJ_DIM)
    p["w_proj_txt"], p["b_proj_txt"] = dense(keys[1], EMBED_DIM, PROJ_DIM)
    p["wv_i2t"], p["bv_i2t"] = dense(keys[2], PROJ_DIM, PROJ_DIM)
    p["wo_i2t"], p["bo_i2t"] = dense(keys[3], PROJ_DIM, PROJ_DIM)
    p["wv_t2i"], p["bv_t2i"] = dense(keys[4], PROJ_DIM, PROJ_DIM)
    p["wo_t2i"], p["bo_t2i"] = dense(keys[5], PROJ_DIM, PROJ_DIM)
    p["w_cnn"], p["b_cnn"] = dense(keys[6], FUSION_DIM, CNN_OUT)
    p["w_mlp1"], p["b_mlp1"] = dense(keys[7], CNN_OUT, HIDDEN)
    p["w_mlp2"], p["b_mlp2"] = dense(keys[8], HIDDEN, NUM_CLASSES)

    # synthetic stand-in for the frozen CLIP backbone (plain-JAX glue)
    clip = {
        "w_img": jax.random.normal(keys[9], (IMG_C * IMG_H * IMG_W, EMBED_DIM), jnp.float32) * 0.02,
        "b_img": jax.random.normal(keys[10], (EMBED_DIM,), jnp.float32) * 0.02,
        "embed_table": jax.random.normal(keys[11], (VOCAB, EMBED_DIM), jnp.float32) * 0.02,
        "w_txt": jax.random.normal(keys[12], (EMBED_DIM, EMBED_DIM), jnp.float32) * 0.02,
        "b_txt": jax.random.normal(keys[13], (EMBED_DIM,), jnp.float32) * 0.02,
    }
    return p, clip


def synthetic_clip_features(pixel_values, input_ids, attention_mask, clip):
    # TODO(synk): the pretrained CLIP vision/text towers have no clean Pallas
    # equivalent; this deterministic linear feature extractor only reproduces
    # the (B, embed_dim) output shapes expected by the fusion head.
    b = pixel_values.shape[0]
    img_flat = pixel_values.reshape(b, -1)                       # NCHW flattened
    img_feat = img_flat @ clip["w_img"] + clip["b_img"]          # (B, EMBED_DIM)
    tok = jnp.take(clip["embed_table"], input_ids, axis=0)       # (B, S, E)
    mask = attention_mask[..., None].astype(jnp.float32)
    pooled = (tok * mask).sum(axis=1) / jnp.maximum(mask.sum(axis=1), 1.0)
    txt_feat = pooled @ clip["w_txt"] + clip["b_txt"]            # (B, EMBED_DIM)
    return img_feat, txt_feat


# ------------------------------- end-to-end forward ---------------------------
@jax.jit
def multimodal_classifier_forward(pixel_values, input_ids, attention_mask,
                                  clip, w_slab, b_slab):
    img_feat, txt_feat = synthetic_clip_features(pixel_values, input_ids,
                                                 attention_mask, clip)
    b = img_feat.shape[0]
    # pack both modalities into one lane-dense (8,128) input tile: concat + pad
    x = jnp.concatenate([img_feat, txt_feat], axis=1)            # (B, 2E)
    x = jnp.pad(x, ((0, PAD_M - b), (0, PAD_N - 2 * EMBED_DIM)))
    out_pad = fused_head(x, w_slab, b_slab)
    return out_pad[:b, :NUM_CLASSES]


# ------------------------------ plain-JAX reference ---------------------------
def reference_forward(pixel_values, input_ids, attention_mask, clip, p):
    img_clip, txt_clip = synthetic_clip_features(pixel_values, input_ids,
                                                 attention_mask, clip)
    img = jax.nn.relu(img_clip @ p["w_proj_img"] + p["b_proj_img"])
    txt = jax.nn.relu(txt_clip @ p["w_proj_txt"] + p["b_proj_txt"])
    # seq-len-1 MultiheadAttention (eval): attended = out_proj(value_proj(kv))
    att_img = (txt @ p["wv_i2t"] + p["bv_i2t"]) @ p["wo_i2t"] + p["bo_i2t"]
    att_txt = (img @ p["wv_t2i"] + p["bv_t2i"]) @ p["wo_t2i"] + p["bo_t2i"]
    fused = jnp.concatenate([img, txt, att_img, att_txt], axis=1)
    cnn = jax.nn.relu(fused @ p["w_cnn"] + p["b_cnn"])           # Conv1d(k=1)
    h = jax.nn.relu(cnn @ p["w_mlp1"] + p["b_mlp1"])
    return h @ p["w_mlp2"] + p["b_mlp2"]


# ----------------------------------- main -------------------------------------
if __name__ == "__main__":
    key = jax.random.PRNGKey(0)
    k_px, k_ids, k_params = jax.random.split(key, 3)

    pixel_values = jax.random.normal(k_px, (BATCH, IMG_C, IMG_H, IMG_W), jnp.float32)  # NCHW
    input_ids = jax.random.randint(k_ids, (BATCH, SEQ), 0, VOCAB, dtype=jnp.int32)
    attention_mask = jnp.ones((BATCH, SEQ), jnp.int32)

    params, clip = init_params(k_params)
    w_slab, b_slab = fold_and_pack_params(params)   # done once, outside the hot path

    logits = multimodal_classifier_forward(pixel_values, input_ids, attention_mask,
                                           clip, w_slab, b_slab)
    logits = jax.block_until_ready(logits)

    assert logits.shape == (BATCH, NUM_CLASSES), logits.shape
    assert logits.dtype == jnp.float32

    # tolerance check against the unfolded reference (fp reordering only)
    ref = reference_forward(pixel_values, input_ids, attention_mask, clip, params)
    assert jnp.allclose(logits, ref, atol=1e-5, rtol=1e-3), (
        float(jnp.max(jnp.abs(logits - ref))))

    print("KERNEL_OK")
</pallas_src>

<mosaic_0001>
module attributes {stable_mosaic.version = 11 : i64} {
  func.func @fused_head_kernel(%arg0: memref<8x128xf32, #tpu.memory_space<vmem>>, %arg1: memref<4x128x128xf32, #tpu.memory_space<vmem>>, %arg2: memref<8x128xf32, #tpu.memory_space<vmem>>, %arg3: memref<8x128xf32, #tpu.memory_space<vmem>>) attributes {dimension_semantics = [], scalar_prefetch = 0 : i64, scratch_operands = 0 : i64, tpu.core_type = #tpu.core_type<tc>} {
    %c0 = arith.constant 0 : index
    %c0_0 = arith.constant 0 : index
    %0 = vector.load %arg0[%c0, %c0_0] : memref<8x128xf32, #tpu.memory_space<vmem>>, vector<8x128xf32>
    %c0_1 = arith.constant 0 : index
    %c0_2 = arith.constant 0 : index
    %1 = vector.load %arg2[%c0_1, %c0_2] : memref<8x128xf32, #tpu.memory_space<vmem>>, vector<8x128xf32>
    %c0_3 = arith.constant 0 : index
    %c0_4 = arith.constant 0 : index
    %c0_5 = arith.constant 0 : index
    %2 = vector.load %arg1[%c0_3, %c0_4, %c0_5] : memref<4x128x128xf32, #tpu.memory_space<vmem>>, vector<1x128x128xf32>
    %3 = vector.shape_cast %2 : vector<1x128x128xf32> to vector<128x128xf32>
    %cst = arith.constant dense<0.000000e+00> : vector<8x128xf32>
    %4 = tpu.matmul %0, %3, %cst {dimension_numbers = #tpu.dot_dimension_numbers<[1], [0], [0], [1], [0, 0, 1, 1], [], []>, precision = #tpu.contract_precision<fp32>} : vector<8x128xf32>, vector<128x128xf32>, vector<8x128xf32> -> vector<8x128xf32>
    %5 = vector.extract_strided_slice %1 {offsets = [0, 0], sizes = [1, 128], strides = [1, 1]} : vector<8x128xf32> to vector<1x128xf32>
    %6 = vector.broadcast %5 : vector<1x128xf32> to vector<8x128xf32>
    %7 = arith.addf %4, %6 : vector<8x128xf32>
    %cst_6 = arith.constant 0.000000e+00 : f32
    %8 = vector.broadcast %cst_6 : f32 to vector<8x128xf32>
    %9 = arith.maximumf %7, %8 : vector<8x128xf32>
    %c1 = arith.constant 1 : index
    %c0_7 = arith.constant 0 : index
    %c0_8 = arith.constant 0 : index
    %10 = vector.load %arg1[%c1, %c0_7, %c0_8] : memref<4x128x128xf32, #tpu.memory_space<vmem>>, vector<1x128x128xf32>
    %11 = vector.shape_cast %10 : vector<1x128x128xf32> to vector<128x128xf32>
    %cst_9 = arith.constant dense<0.000000e+00> : vector<8x128xf32>
    %12 = tpu.matmul %9, %11, %cst_9 {dimension_numbers = #tpu.dot_dimension_numbers<[1], [0], [0], [1], [0, 0, 1, 1], [], []>, precision = #tpu.contract_precision<fp32>} : vector<8x128xf32>, vector<128x128xf32>, vector<8x128xf32> -> vector<8x128xf32>
    %13 = vector.extract_strided_slice %1 {offsets = [1, 0], sizes = [1, 128], strides = [1, 1]} : vector<8x128xf32> to vector<1x128xf32>
    %14 = vector.broadcast %13 : vector<1x128xf32> to vector<8x128xf32>
    %15 = arith.addf %12, %14 : vector<8x128xf32>
    %cst_10 = arith.constant 0.000000e+00 : f32
    %16 = vector.broadcast %cst_10 : f32 to vector<8x128xf32>
    %17 = arith.maximumf %15, %16 : vector<8x128xf32>
    %c2 = arith.constant 2 : index
    %c0_11 = arith.constant 0 : index
    %c0_12 = arith.constant 0 : index
    %18 = vector.load %arg1[%c2, %c0_11, %c0_12] : memref<4x128x128xf32, #tpu.memory_space<vmem>>, vector<1x128x128xf32>
    %19 = vector.shape_cast %18 : vector<1x128x128xf32> to vector<128x128xf32>
    %cst_13 = arith.constant dense<0.000000e+00> : vector<8x128xf32>
    %20 = tpu.matmul %17, %19, %cst_13 {dimension_numbers = #tpu.dot_dimension_numbers<[1], [0], [0], [1], [0, 0, 1, 1], [], []>, precision = #tpu.contract_precision<fp32>} : vector<8x128xf32>, vector<128x128xf32>, vector<8x128xf32> -> vector<8x128xf32>
    %21 = vector.extract_strided_slice %1 {offsets = [2, 0], sizes = [1, 128], strides = [1, 1]} : vector<8x128xf32> to vector<1x128xf32>
    %22 = vector.broadcast %21 : vector<1x128xf32> to vector<8x128xf32>
    %23 = arith.addf %20, %22 : vector<8x128xf32>
    %cst_14 = arith.constant 0.000000e+00 : f32
    %24 = vector.broadcast %cst_14 : f32 to vector<8x128xf32>
    %25 = arith.maximumf %23, %24 : vector<8x128xf32>
    %c3 = arith.constant 3 : index
    %c0_15 = arith.constant 0 : index
    %c0_16 = arith.constant 0 : index
    %26 = vector.load %arg1[%c3, %c0_15, %c0_16] : memref<4x128x128xf32, #tpu.memory_space<vmem>>, vector<1x128x128xf32>
    %27 = vector.shape_cast %26 : vector<1x128x128xf32> to vector<128x128xf32>
    %cst_17 = arith.constant dense<0.000000e+00> : vector<8x128xf32>
    %28 = tpu.matmul %25, %27, %cst_17 {dimension_numbers = #tpu.dot_dimension_numbers<[1], [0], [0], [1], [0, 0, 1, 1], [], []>, precision = #tpu.contract_precision<fp32>} : vector<8x128xf32>, vector<128x128xf32>, vector<8x128xf32> -> vector<8x128xf32>
    %29 = vector.extract_strided_slice %1 {offsets = [3, 0], sizes = [1, 128], strides = [1, 1]} : vector<8x128xf32> to vector<1x128xf32>
    %30 = vector.broadcast %29 : vector<1x128xf32> to vector<8x128xf32>
    %31 = arith.addf %28, %30 : vector<8x128xf32>
    %c0_18 = arith.constant 0 : index
    %c0_19 = arith.constant 0 : index
    %32 = vector.load %arg3[%c0_18, %c0_19] : memref<8x128xf32, #tpu.memory_space<vmem>>, vector<8x128xf32>
    tpu.vector_store %arg3[%c0_18, %c0_19], %31 {strides = array<i32>} : memref<8x128xf32, #tpu.memory_space<vmem>>, vector<8x128xf32>,
    return
  }
}

</mosaic_0001>

<bundles_post_ra>
// kernel: multimodal_classifier_forward.1
= control target key start
LH: loop header
LB: loop body
LE: loop exit
PB: predicated region body
PF: predicated region fallthrough
CT: control target
= control target key end

     0   :  { %v4591_v0 = vmov 0.0|0.0   ;;  %vm4592_vm0 = vmmov 0   ;;  %v4593_v4 = vmov 0.0   ;;  %s5870_s1 = inlined_call_operand.vmem [shape: f32[4,128,128], index: 1, kind: input, shape index: {}]   ;;  %s5871_s0 = inlined_call_operand.vmem [shape: f32[8,128], index: 0, kind: input, shape index: {}]   ;;  %s5872_s2 = inlined_call_operand.vmem [shape: f32[8,128], index: 2, kind: input, shape index: {}]   ;;  %s5873_s3 = inlined_call_operand.vmem [shape: f32[8,128], index: 3, kind: output, shape index: {}]  }
   0x1   :  { %3967 = vmatprep.subr.bf16.mxu0 %v4591_v0  ;;  %v16_v1 = vld [vmem:[%s5870_s1] sm:$0xff]  ;;  %v17_v2 = vld [vmem:[%s5870_s1 + $0x8] sm:$0xff]  ;;  %v18_v3 = vld [vmem:[%s5870_s1 + $0x10] sm:$0xff]  ;;  %3159 = vmatprep.mubr.msk.f32.mxu0 %vm4592_vm0, %v4593_v4 }
   0x2   :  { %v37_v5 = vand.u32 4294901760, %v16_v1  ;;  %v40_v6 = vand.u32 4294901760, %v17_v2  ;;  %v19_v7 = vld [vmem:[%s5870_s1 + $0x18] sm:$0xff]  ;;  %v43_v8 = vand.u32 4294901760, %v18_v3  ;;  %4111 = vmatprep.subr.bf16.mxu1 %v4591_v0  ;;  %3369 = vmatprep.mubr.msk.f32.mxu1 %vm4592_vm0, %v4593_v4  ;;  %v20_v10 = vld [vmem:[%s5870_s1 + $0x20] sm:$0xff]  ;;  %v21_v11 = vld [vmem:[%s5870_s1 + $0x28] sm:$0xff] }
   0x3   :  { %v46_v9 = vand.u32 4294901760, %v19_v7  ;;  %v49_v14 = vand.u32 4294901760, %v20_v10  ;;  %v52_v15 = vand.u32 4294901760, %v21_v11  ;;  %v22_v16 = vld [vmem:[%s5870_s1 + $0x30] sm:$0xff]  ;;  %v23_v17 = vld [vmem:[%s5870_s1 + $0x38] sm:$0xff]  ;;  %v24_v21 = vld [vmem:[%s5870_s1 + $0x40] sm:$0xff] }
   0x4   :  { %v4638_v12 = vpack.c.bf16 %v40_v6, %v37_v5  ;;  %v55_v19 = vand.u32 4294901760, %v22_v16  ;;  %v58_v20 = vand.u32 4294901760, %v23_v17  ;;  %v25_v22 = vld [vmem:[%s5870_s1 + $0x48] sm:$0xff]  ;;  %v14_v23 = vld [vmem:[%s5871_s0] sm:$0xff]  ;;  %v4663_v24 = vsub.f32 %v16_v1, %v37_v5  ;;  %v26_v29 = vld [vmem:[%s5870_s1 + $0x50] sm:$0xff] }
   0x5   :  { %v4641_v13 = vpack.c.bf16 %v46_v9, %v43_v8  ;;  %v4651_v18 = vpack.c.bf16 %v52_v15, %v49_v14  ;;  %v4665_v25 = vsub.f32 %v17_v2, %v40_v6  ;;  %v61_v27 = vand.u32 4294901760, %v24_v21  ;;  %v27_v30 = vld [vmem:[%s5870_s1 + $0x58] sm:$0xff]  ;;  %v28_v32 = vld [vmem:[%s5870_s1 + $0x60] sm:$0xff]  ;;  %v29_v35 = vld [vmem:[%s5870_s1 + $0x68] sm:$0xff] }
   0x6   :  { %3969 = vmatpush3.bf16.msra.mxu0 %v4638_v12  ;;  %v4668_v26 = vpack.c.bf16 %v58_v20, %v55_v19  ;;  %v64_v28 = vand.u32 4294901760, %v25_v22  ;;  %v4677_v31 = vand.u32 4294901760, %v14_v23  ;;  %v4682_v33 = vsub.f32 %v18_v3, %v43_v8  ;;  %v30_v36 = vld [vmem:[%s5870_s1 + $0x70] sm:$0xff]  ;;  %v31_v37 = vld [vmem:[%s5870_s1 + $0x78] sm:$0xff] }
   0x7   :  { %3970 = vmatprep.subr.bf16.mxu0 %v4591_v0  ;;  %v67_v34 = vand.u32 4294901760, %v26_v29  ;;  %v70_v39 = vand.u32 4294901760, %v27_v30  ;;  %v130_v40 = vand.u32 4294901760, %v4663_v24  ;;  %v137_v41 = vand.u32 4294901760, %v4665_v25 }
   0x8   :  { %v4694_v38 = vpack.c.bf16 %v64_v28, %v61_v27  ;;  %v4698_v42 = vsub.f32 %v19_v7, %v46_v9  ;;  %v4700_v43 = vsub.f32 %v20_v10, %v49_v14  ;;  %v4702_v44 = vsub.f32 %v21_v11, %v52_v15 }
   0x9   :  { %v4706_v45 = vsub.f32 %v14_v23, %v4677_v31  ;;  %v73_v46 = vand.u32 4294901760, %v28_v32  ;;  %v76_v47 = vand.u32 4294901760, %v29_v35  ;;  %v79_v48 = vand.u32 4294901760, %v30_v36 }
   0xa   :  { %3972 = vmatpush3.bf16.msra.mxu0 %v4641_v13  ;;  %v82_v49 = vand.u32 4294901760, %v31_v37  ;;  %v4708_v50 = vsub.f32 %v22_v16, %v55_v19  ;;  %v4710_v51 = vsub.f32 %v23_v17, %v58_v20  ;;  %v4712_v52 = vsub.f32 %v24_v21, %v61_v27 }
   0xb   :  { %3973 = vmatprep.subr.bf16.mxu0 %v4591_v0  ;;  %v144_v53 = vand.u32 4294901760, %v4682_v33  ;;  %v4716_v54 = vsub.f32 %v25_v22, %v64_v28  ;;  %v4718_v55 = vpack.c.bf16 %v70_v39, %v67_v34  ;;  %v131_v56 = vsub.f32 %v4663_v24, %v130_v40 }
   0xc   :  { %v138_v57 = vsub.f32 %v4665_v25, %v137_v41  ;;  %v4723_v58 = vsub.f32 %v26_v29, %v67_v34  ;;  %v4725_v59 = vsub.f32 %v27_v30, %v70_v39  ;;  %v4727_v60 = vsub.f32 %v28_v32, %v73_v46 }
   0xd   :  { %v119_v61 = vand.u32 4294901760, %v4706_v45  ;;  %v4730_v62 = vpack.c.bf16 %v76_v47, %v73_v46  ;;  %v4732_v63 = vsub.f32 %v29_v35, %v76_v47  ;;  %v4734_v1 = vpack.c.bf16 %v82_v49, %v79_v48 }
   0xe   :  { %3975 = vmatpush3.bf16.msra.mxu0 %v4651_v18  ;;  %v4736_v2 = vsub.f32 %v30_v36, %v79_v48  ;;  %v4738_v3 = vsub.f32 %v31_v37, %v82_v49  ;;  %v145_v5 = vsub.f32 %v4682_v33, %v144_v53  ;;  %v151_v6 = vand.u32 4294901760, %v4698_v42 }
   0xf   :  { %3976 = vmatprep.subr.bf16.mxu0 %v4591_v0  ;;  %v158_v7 = vand.u32 4294901760, %v4700_v43  ;;  %v132_v8 = vand.u32 4294901760, %v131_v56  ;;  %v139_v9 = vand.u32 4294901760, %v138_v57  ;;  %v165_v10 = vand.u32 4294901760, %v4702_v44 }
  0x10   :  { %v172_v11 = vand.u32 4294901760, %v4708_v50  ;;  %v120_v14 = vsub.f32 %v4706_v45, %v119_v61  ;;  %v179_v15 = vand.u32 4294901760, %v4710_v51  ;;  %v186_v16 = vand.u32 4294901760, %v4712_v52 }
  0x11   :  { %v193_v17 = vand.u32 4294901760, %v4716_v54  ;;  %v200_v19 = vand.u32 4294901760, %v4723_v58  ;;  %v207_v20 = vand.u32 4294901760, %v4725_v59  ;;  %v214_v21 = vand.u32 4294901760, %v4727_v60 }
  0x12   :  { %3978 = vmatpush3.bf16.msra.mxu0 %v4668_v26  ;;  %v221_v22 = vand.u32 4294901760, %v4732_v63  ;;  %v228_v23 = vand.u32 4294901760, %v4736_v2  ;;  %v235_v27 = vand.u32 4294901760, %v4738_v3  ;;  %v4759_v28 = vpack.c.bf16 %v137_v41, %v130_v40 }
  0x13   :  { %3979 = vmatprep.subr.bf16.mxu0 %v4591_v0  ;;  %v4761_v29 = vpack.c.bf16 %v151_v6, %v144_v53  ;;  %v152_v30 = vsub.f32 %v4698_v42, %v151_v6  ;;  %v4765_v32 = vpack.c.bf16 %v165_v10, %v158_v7  ;;  %v4767_v34 = vpack.c.bf16 %v179_v15, %v172_v11 }
  0x14   :  { %v4769_v35 = vpack.c.bf16 %v193_v17, %v186_v16  ;;  %v4772_v36 = vpack.c.bf16 %v207_v20, %v200_v19  ;;  %v4774_v37 = vpack.c.bf16 %v221_v22, %v214_v21  ;;  %v4776_v39 = vpack.c.bf16 %v235_v27, %v228_v23 }
  0x15   :  { %v121_v40 = vand.u32 4294901760, %v120_v14  ;;  %v146_v41 = vand.u32 4294901760, %v145_v5  ;;  %v3992_v46 = vpack.c.bf16 %v139_v9, %v132_v8  ;;  %v153_v47 = vand.u32 4294901760, %v152_v30 }
  0x16   :  { %3981 = vmatpush3.bf16.msra.mxu0 %v4694_v38  ;;  %v159_v48 = vsub.f32 %v4700_v43, %v158_v7  ;;  %v166_v49 = vsub.f32 %v4702_v44, %v165_v10  ;;  %v173_v53 = vsub.f32 %v4708_v50, %v172_v11  ;;  %v180_v14 = vsub.f32 %v4710_v51, %v179_v15 }
  0x17   :  { %3982 = vmatprep.subr.bf16.mxu0 %v4591_v0  ;;  %v3995_v56 = vpack.c.bf16 %v153_v47, %v146_v41  ;;  %v187_v5 = vsub.f32 %v4712_v52, %v186_v16  ;;  %v194_v10 = vsub.f32 %v4716_v54, %v193_v17  ;;  %v201_v15 = vsub.f32 %v4723_v58, %v200_v19 }
  0x18   :  { %v160_v57 = vand.u32 4294901760, %v159_v48  ;;  %v167_v6 = vand.u32 4294901760, %v166_v49  ;;  %v174_v8 = vand.u32 4294901760, %v173_v53  ;;  %v181_v9 = vand.u32 4294901760, %v180_v14 }
  0x19   :  { %v188_v11 = vand.u32 4294901760, %v187_v5  ;;  %v208_v41 = vsub.f32 %v4725_v59, %v207_v20  ;;  %v215_v16 = vsub.f32 %v4727_v60, %v214_v21  ;;  %v202_v47 = vand.u32 4294901760, %v201_v15  ;;  %v2673_v5 = vld [vmem:[%s5870_s1 + $0x90] sm:$0xff]  ;;  %v2678_v15 = vld [vmem:[%s5870_s1 + $0xb8] sm:$0xff] }
  0x1a   :  { %3984 = vmatpush3.bf16.msra.mxu0 %v4718_v55  ;;  %v3998_v7 = vpack.c.bf16 %v167_v6, %v160_v57  ;;  %v4001_v30 = vpack.c.bf16 %v181_v9, %v174_v8  ;;  %v222_v17 = vsub.f32 %v4732_v63, %v221_v22  ;;  %v229_v19 = vsub.f32 %v4736_v2, %v228_v23  ;;  %v2671_v23 = vld [vmem:[%s5870_s1 + $0x80] sm:$0xff]  ;;  %v2674_v8 = vld [vmem:[%s5870_s1 + $0x98] sm:$0xff] }
  0x1b   :  { %3985 = vmatprep.subr.bf16.mxu0 %v4591_v0  ;;  %v209_v48 = vand.u32 4294901760, %v208_v41  ;;  %v216_v49 = vand.u32 4294901760, %v215_v16  ;;  %v236_v20 = vsub.f32 %v4738_v3, %v235_v27  ;;  %v4016_v14 = vpack.c.bf16 %v4665_v25, %v4663_v24  ;;  %v2672_v27 = vld [vmem:[%s5870_s1 + $0x88] sm:$0xff]  ;;  %v2679_v41 = vld [vmem:[%s5870_s1 + $0xc0] sm:$0xff] }
  0x1c   :  { %v230_v57 = vand.u32 4294901760, %v229_v19  ;;  %v4019_v24 = vpack.c.bf16 %v4698_v42, %v4682_v33  ;;  %v700_v25 = vand.u32 4294901760, %v2671_v23  ;;  %v706_v9 = vand.u32 4294901760, %v2673_v5 }
  0x1d   :  { %v4007_v53 = vpack.c.bf16 %v209_v48, %v202_v47  ;;  %v237_v6 = vand.u32 4294901760, %v236_v20  ;;  %v709_v33 = vand.u32 4294901760, %v2674_v8 }
  0x1e   :  { %3987 = vmatpush3.bf16.msra.mxu0 %v4730_v62  ;;  %v4843_v48 = vsub.f32 %v2673_v5, %v706_v9 }
  0x1f   :  { %3988 = vmatprep.subr.bf16.mxu0 %v4591_v0  ;;  %v4013_v22 = vpack.c.bf16 %v237_v6, %v230_v57  ;;  %v721_v57 = vand.u32 4294901760, %v2678_v15  ;;  %v724_v6 = vand.u32 4294901760, %v2679_v41 }
  0x22   :  { %3990 = vmatpush3.bf16.msra.mxu0 %v4734_v1 }
  0x23   :  { %3991 = vmatprep.subr.bf16.mxu0 %v4591_v0 }
  0x25   :  { %3160 = vmatmul.mubr.f32.vlgmr.msra.gmra.mrb[0].mxu0 %v121_v40  ;;  %v195_v40 = vand.u32 4294901760, %v194_v10  ;;  %v2675_v10 = vld [vmem:[%s5870_s1 + $0xa0] sm:$0xff] }
  0x26   :  { %3993 = vmatpush3.bf16.msra.mxu0 %v3992_v46  ;;  %3194 = vmatprep.mubr.msk.f32.mxu0 %vm4592_vm0, %v4593_v4  ;;  %v712_v42 = vand.u32 4294901760, %v2675_v10 }
  0x27   :  { %3994 = vmatprep.subr.bf16.mxu0 %v4591_v0  ;;  %v4004_v46 = vpack.c.bf16 %v195_v40, %v188_v11  ;;  %v2676_v11 = vld [vmem:[%s5870_s1 + $0xa8] sm:$0xff]  ;;  %v2677_v40 = vld [vmem:[%s5870_s1 + $0xb0] sm:$0xff] }
  0x28   :  { %v4854_v19 = vsub.f32 %v2675_v10, %v712_v42 }
  0x2a   :  { %3996 = vmatpush3.bf16.msra.mxu0 %v3995_v56  ;;  %v223_v56 = vand.u32 4294901760, %v222_v17  ;;  %v2680_v17 = vld [vmem:[%s5870_s1 + $0xc8] sm:$0xff] }
  0x2b   :  { %3997 = vmatprep.subr.bf16.mxu0 %v4591_v0 }
  0x2c   :  { %v4010_v21 = vpack.c.bf16 %v223_v56, %v216_v49  ;;  %v4022_v49 = vpack.c.bf16 %v4702_v44, %v4700_v43  ;;  %v4852_v56 = vsub.f32 %v2674_v8, %v709_v33  ;;  %v4863_v44 = vsub.f32 %v2678_v15, %v721_v57 }
  0x2d   :  { %v807_v8 = vand.u32 4294901760, %v4843_v48  ;;  %v5885_v15 = vand.u32 4294901760, %v4854_v19 }
  0x2e   :  { %3999 = vmatpush3.bf16.msra.mxu0 %v3998_v7  ;;  %v703_v7 = vand.u32 4294901760, %v2672_v27 }
  0x2f   :  { %4000 = vmatprep.subr.bf16.mxu0 %v4591_v0 }
  0x30   :  { %v4837_v16 = vpack.c.bf16 %v703_v7, %v700_v25  ;;  %v4841_v47 = vsub.f32 %v2672_v27, %v703_v7  ;;  %v4025_v27 = vpack.c.bf16 %v4710_v51, %v4708_v50  ;;  %v4031_v50 = vpack.c.bf16 %v4725_v59, %v4723_v58 }
  0x32   :  { %4002 = vmatpush3.bf16.msra.mxu0 %v4001_v30  ;;  %v715_v30 = vand.u32 4294901760, %v2676_v11  ;;  %4113 = vmatpush3.bf16.msra.mxu1 %v4837_v16 }
  0x33   :  { %4003 = vmatprep.subr.bf16.mxu0 %v4591_v0  ;;  %4114 = vmatprep.subr.bf16.mxu1 %v4591_v0 }
  0x34   :  { %v4857_v20 = vsub.f32 %v2676_v11, %v715_v30  ;;  %v4872_v5 = vpack.c.bf16 %v715_v30, %v712_v42  ;;  %v808_v11 = vsub.f32 %v4843_v48, %v807_v8 }
  0x36   :  { %4005 = vmatpush3.bf16.msra.mxu0 %v4004_v46  ;;  %v4839_v46 = vsub.f32 %v2671_v23, %v700_v25  ;;  %v809_v30 = vand.u32 4294901760, %v808_v11 }
  0x37   :  { %4006 = vmatprep.subr.bf16.mxu0 %v4591_v0 }
  0x3a   :  { %4008 = vmatpush3.bf16.msra.mxu0 %v4007_v53  ;;  %v4850_v53 = vpack.c.bf16 %v709_v33, %v706_v9  ;;  %v5886_v9 = vand.u32 4294901760, %v4852_v56 }
  0x3b   :  { %4009 = vmatprep.subr.bf16.mxu0 %v4591_v0 }
  0x3c   :  { %4116 = vmatpush3.bf16.msra.mxu1 %v4850_v53  ;;  %v815_v33 = vsub.f32 %v4852_v56, %v5886_v9 }
  0x3d   :  { %4117 = vmatprep.subr.bf16.mxu1 %v4591_v0 }
  0x3e   :  { %4011 = vmatpush3.bf16.msra.mxu0 %v4010_v21  ;;  %v718_v21 = vand.u32 4294901760, %v2677_v40 }
  0x3f   :  { %4012 = vmatprep.subr.bf16.mxu0 %v4591_v0 }
  0x40   :  { %v4861_v43 = vsub.f32 %v2677_v40, %v718_v21  ;;  %4119 = vmatpush3.bf16.msra.mxu1 %v4872_v5  ;;  %v4879_v25 = vpack.c.bf16 %v721_v57, %v718_v21  ;;  %v816_v40 = vand.u32 4294901760, %v815_v33 }
  0x41   :  { %4120 = vmatprep.subr.bf16.mxu1 %v4591_v0 }
  0x42   :  { %4014 = vmatpush3.bf16.msra.mxu0 %v4013_v22  ;;  %v727_v22 = vand.u32 4294901760, %v2680_v17 }
  0x43   :  { %4015 = vmatprep.subr.bf16.mxu0 %v4591_v0 }
  0x44   :  { %v4867_v23 = vsub.f32 %v2680_v17, %v727_v22  ;;  %4122 = vmatpush3.bf16.msra.mxu1 %v4879_v25  ;;  %v4886_v51 = vpack.c.bf16 %v727_v22, %v724_v6  ;;  %v5022_v17 = vpack.c.bf16 %v816_v40, %v809_v30  ;;  %v5883_v22 = vand.u32 4294901760, %v4861_v43 }
  0x45   :  { %3195 = vmatmul.mubr.f32.vlgmr.msra.gmra.mrb[0].mxu0 %v4677_v31  ;;  %4123 = vmatprep.subr.bf16.mxu1 %v4591_v0 }
  0x46   :  { %4017 = vmatpush3.bf16.msra.mxu0 %v4016_v14  ;;  %3229 = vmatprep.mubr.msk.f32.mxu0 %vm4592_vm0, %v4593_v4  ;;  %v4865_v14 = vsub.f32 %v2679_v41, %v724_v6  ;;  %v5884_v41 = vand.u32 4294901760, %v4857_v20 }
  0x47   :  { %4018 = vmatprep.subr.bf16.mxu0 %v4591_v0 }
  0x48   :  { %4125 = vmatpush3.bf16.msra.mxu1 %v4886_v51  ;;  %v829_v21 = vsub.f32 %v4857_v20, %v5884_v41 }
  0x49   :  { %4126 = vmatprep.subr.bf16.mxu1 %v4591_v0 }
  0x4a   :  { %4020 = vmatpush3.bf16.msra.mxu0 %v4019_v24  ;;  %v4028_v24 = vpack.c.bf16 %v4716_v54, %v4712_v52  ;;  %v4034_v52 = vpack.c.bf16 %v4732_v63, %v4727_v60  ;;  %v4037_v54 = vpack.c.bf16 %v4738_v3, %v4736_v2  ;;  %v2685_v60 = vld [vmem:[%s5870_s1 + $0xf0] sm:$0xff]  ;;  %v830_v6 = vand.u32 4294901760, %v829_v21 }
  0x4b   :  { %4021 = vmatprep.subr.bf16.mxu0 %v4591_v0  ;;  %v742_v3 = vand.u32 4294901760, %v2685_v60 }
  0x4e   :  { %4023 = vmatpush3.bf16.msra.mxu0 %v4022_v49  ;;  %v822_v49 = vsub.f32 %v4854_v19, %v5885_v15 }
  0x4f   :  { %4024 = vmatprep.subr.bf16.mxu0 %v4591_v0 }
  0x50   :  { %v823_v57 = vand.u32 4294901760, %v822_v49 }
  0x52   :  { %4026 = vmatpush3.bf16.msra.mxu0 %v4025_v27  ;;  %v5882_v27 = vand.u32 4294901760, %v4863_v44 }
  0x53   :  { %4027 = vmatprep.subr.bf16.mxu0 %v4591_v0 }
  0x56   :  { %4029 = vmatpush3.bf16.msra.mxu0 %v4028_v24  ;;  %v4142_v24 = vpack.c.bf16 %v830_v6, %v823_v57 }
  0x57   :  { %4030 = vmatprep.subr.bf16.mxu0 %v4591_v0 }
  0x5a   :  { %4032 = vmatpush3.bf16.msra.mxu0 %v4031_v50  ;;  %v836_v50 = vsub.f32 %v4861_v43, %v5883_v22  ;;  %v2696_v22 = vld [vmem:[%s5870_s1 + $0x148] sm:$0xff] }
  0x5b   :  { %4033 = vmatprep.subr.bf16.mxu0 %v4591_v0 }
  0x5e   :  { %4035 = vmatpush3.bf16.msra.mxu0 %v4034_v52  ;;  %v843_v52 = vsub.f32 %v4863_v44, %v5882_v27 }
  0x5f   :  { %4036 = vmatprep.subr.bf16.mxu0 %v4591_v0 }
  0x62   :  { %4038 = vmatpush3.bf16.msra.mxu0 %v4037_v54  ;;  %v837_v54 = vand.u32 4294901760, %v836_v50 }
  0x63   :  { %4039 = vmatprep.subr.bf16.mxu0 %v4591_v0 }
  0x65   :  { %3230 = vmatmul.mubr.f32.vlgmr.msra.gmra.mrb[0].mxu0 %v4706_v45  ;;  %v2683_v45 = vld [vmem:[%s5870_s1 + $0xe0] sm:$0xff] }
  0x66   :  { %4041 = vmatpush3.bf16.msra.mxu0 %v4638_v12  ;;  %3264 = vmatprep.mubr.msk.f32.mxu0 %vm4592_vm0, %v4593_v4 }
  0x67   :  { %4042 = vmatprep.subr.bf16.mxu0 %v4591_v0 }
  0x6a   :  { %4044 = vmatpush3.bf16.msra.mxu0 %v4641_v13 }
  0x6b   :  { %4045 = vmatprep.subr.bf16.mxu0 %v4591_v0 }
  0x6e   :  { %4047 = vmatpush3.bf16.msra.mxu0 %v4651_v18 }
  0x6f   :  { %4048 = vmatprep.subr.bf16.mxu0 %v4591_v0 }
  0x72   :  { %4050 = vmatpush3.bf16.msra.mxu0 %v4668_v26 }
  0x73   :  { %4051 = vmatprep.subr.bf16.mxu0 %v4591_v0 }
  0x76   :  { %4053 = vmatpush3.bf16.msra.mxu0 %v4694_v38 }
  0x77   :  { %4054 = vmatprep.subr.bf16.mxu0 %v4591_v0 }
  0x7a   :  { %4056 = vmatpush3.bf16.msra.mxu0 %v4718_v55 }
  0x7b   :  { %4057 = vmatprep.subr.bf16.mxu0 %v4591_v0 }
  0x7e   :  { %4059 = vmatpush3.bf16.msra.mxu0 %v4730_v62 }
  0x7f   :  { %4060 = vmatprep.subr.bf16.mxu0 %v4591_v0 }
  0x82   :  { %4062 = vmatpush3.bf16.msra.mxu0 %v4734_v1 }
  0x83   :  { %4063 = vmatprep.subr.bf16.mxu0 %v4591_v0 }
  0x85   :  { %3265 = vmatmul.mubr.f32.vlgmr.msra.gmra.mrb[0].mxu0 %v119_v61  ;;  %v2686_v61 = vld [vmem:[%s5870_s1 + $0xf8] sm:$0xff] }
  0x86   :  { %4065 = vmatpush3.bf16.msra.mxu0 %v4759_v28  ;;  %3299 = vmatprep.mubr.msk.f32.mxu0 %vm4592_vm0, %v4593_v4  ;;  %v745_v28 = vand.u32 4294901760, %v2686_v61 }
  0x87   :  { %4066 = vmatprep.subr.bf16.mxu0 %v4591_v0 }
  0x8a   :  { %4068 = vmatpush3.bf16.msra.mxu0 %v4761_v29  ;;  %v793_v29 = vand.u32 4294901760, %v4839_v46 }
  0x8b   :  { %4069 = vmatprep.subr.bf16.mxu0 %v4591_v0 }
  0x8e   :  { %4071 = vmatpush3.bf16.msra.mxu0 %v4765_v32  ;;  %v800_v32 = vand.u32 4294901760, %v4841_v47 }
  0x8f   :  { %4072 = vmatprep.subr.bf16.mxu0 %v4591_v0 }
  0x92   :  { %4074 = vmatpush3.bf16.msra.mxu0 %v4767_v34  ;;  %v4996_v34 = vpack.c.bf16 %v745_v28, %v742_v3 }
  0x93   :  { %4075 = vmatprep.subr.bf16.mxu0 %v4591_v0 }
  0x96   :  { %4077 = vmatpush3.bf16.msra.mxu0 %v4769_v35  ;;  %v4998_v35 = vsub.f32 %v2685_v60, %v742_v3 }
  0x97   :  { %4078 = vmatprep.subr.bf16.mxu0 %v4591_v0 }
  0x98   :  { %v5875_v57 = vand.u32 4294901760, %v4998_v35 }
  0x9a   :  { %4080 = vmatpush3.bf16.msra.mxu0 %v4772_v36  ;;  %v5000_v36 = vsub.f32 %v2686_v61, %v745_v28 }
  0x9b   :  { %4081 = vmatprep.subr.bf16.mxu0 %v4591_v0 }
  0x9c   :  { %v5874_v6 = vand.u32 4294901760, %v5000_v36 }
  0x9e   :  { %4083 = vmatpush3.bf16.msra.mxu0 %v4774_v37  ;;  %v794_v37 = vsub.f32 %v4839_v46, %v793_v29 }
  0x9f   :  { %4084 = vmatprep.subr.bf16.mxu0 %v4591_v0 }
  0xa0   :  { %v795_v7 = vand.u32 4294901760, %v794_v37 }
  0xa2   :  { %4086 = vmatpush3.bf16.msra.mxu0 %v4776_v39  ;;  %v801_v39 = vsub.f32 %v4841_v47, %v800_v32 }
  0xa3   :  { %4087 = vmatprep.subr.bf16.mxu0 %v4591_v0 }
  0xa4   :  { %v802_v10 = vand.u32 4294901760, %v801_v39 }
  0xa5   :  { %3300 = vmatmul.mubr.f32.vlgmr.msra.gmra.mrb[0].mxu0 %v4677_v31 }
  0xa6   :  { %4089 = vmatpush3.bf16.msra.mxu0 %v4638_v12  ;;  %3334 = vmatprep.mubr.msk.f32.mxu0 %vm4592_vm0, %v4593_v4  ;;  %v2681_v12 = vld [vmem:[%s5870_s1 + $0xd0] sm:$0xff]  ;;  %v5018_v42 = vpack.c.bf16 %v802_v10, %v795_v7 }
  0xa7   :  { %4090 = vmatprep.subr.bf16.mxu0 %v4591_v0 }
  0xaa   :  { %4092 = vmatpush3.bf16.msra.mxu0 %v4641_v13  ;;  %v2682_v13 = vld [vmem:[%s5870_s1 + $0xd8] sm:$0xff] }
  0xab   :  { %4093 = vmatprep.subr.bf16.mxu0 %v4591_v0 }
  0xae   :  { %4095 = vmatpush3.bf16.msra.mxu0 %v4651_v18  ;;  %v730_v18 = vand.u32 4294901760, %v2681_v12 }
  0xaf   :  { %4096 = vmatprep.subr.bf16.mxu0 %v4591_v0 }
  0xb2   :  { %4098 = vmatpush3.bf16.msra.mxu0 %v4668_v26  ;;  %v733_v26 = vand.u32 4294901760, %v2682_v13 }
  0xb3   :  { %4099 = vmatprep.subr.bf16.mxu0 %v4591_v0 }
  0xb4   :  { %v4986_v63 = vsub.f32 %v2682_v13, %v733_v26  ;;  %v5881_v13 = vand.u32 4294901760, %v4865_v14 }
  0xb6   :  { %4101 = vmatpush3.bf16.msra.mxu0 %v4694_v38  ;;  %v4966_v38 = vpack.c.bf16 %v733_v26, %v730_v18  ;;  %v5878_v61 = vand.u32 4294901760, %v4986_v63 }
  0xb7   :  { %4102 = vmatprep.subr.bf16.mxu0 %v4591_v0 }
  0xb8   :  { %4128 = vmatpush3.bf16.msra.mxu1 %v4966_v38  ;;  %v871_v37 = vsub.f32 %v4986_v63, %v5878_v61 }
  0xb9   :  { %4129 = vmatprep.subr.bf16.mxu1 %v4591_v0 }
  0xba   :  { %4104 = vmatpush3.bf16.msra.mxu0 %v4718_v55  ;;  %v736_v55 = vand.u32 4294901760, %v2683_v45  ;;  %v872_v7 = vand.u32 4294901760, %v871_v37  ;;  %v4169_v37 = vpack.c.bf16 %v4863_v44, %v4861_v43 }
  0xbb   :  { %4105 = vmatprep.subr.bf16.mxu0 %v4591_v0 }
  0xbe   :  { %4107 = vmatpush3.bf16.msra.mxu0 %v4730_v62  ;;  %v4984_v62 = vsub.f32 %v2681_v12, %v730_v18  ;;  %v844_v12 = vand.u32 4294901760, %v843_v52  ;;  %v5880_v18 = vand.u32 4294901760, %v4867_v23  ;;  %v892_v52 = vsub.f32 %v4998_v35, %v5875_v57 }
  0xbf   :  { %4108 = vmatprep.subr.bf16.mxu0 %v4591_v0 }
  0xc0   :  { %v4145_v26 = vpack.c.bf16 %v844_v12, %v837_v54  ;;  %v5879_v60 = vand.u32 4294901760, %v4984_v62  ;;  %v899_v54 = vsub.f32 %v5000_v36, %v5874_v6  ;;  %v893_v12 = vand.u32 4294901760, %v892_v52 }
  0xc2   :  { %4110 = vmatpush3.bf16.msra.mxu0 %v4734_v1  ;;  %v4989_v1 = vsub.f32 %v2683_v45, %v736_v55  ;;  %v850_v45 = vsub.f32 %v4865_v14, %v5881_v13  ;;  %v864_v28 = vsub.f32 %v4984_v62, %v5879_v60 }
  0xc3   :  { %4255 = vmatprep.subr.bf16.mxu0 %v4591_v0 }
  0xc4   :  { %v865_v39 = vand.u32 4294901760, %v864_v28  ;;  %v5877_v10 = vand.u32 4294901760, %v4989_v1  ;;  %v4166_v28 = vpack.c.bf16 %v4857_v20, %v4854_v19 }
  0xc5   :  { %3335 = vmatmul.mubr.f32.vlgmr.msra.gmra.mrb[0].mxu0 %v4677_v31  ;;  %v2684_v31 = vld [vmem:[%s5870_s1 + $0xe8] sm:$0xff] }
  0xc6   :  { %3579 = vmatprep.mubr.msk.f32.mxu0 %vm4592_vm0, %v4593_v4  ;;  %v739_v58 = vand.u32 4294901760, %v2684_v31  ;;  %v4151_v33 = vpack.c.bf16 %v872_v7, %v865_v39  ;;  %v878_v30 = vsub.f32 %v4989_v1, %v5877_v10  ;;  %v4172_v39 = vpack.c.bf16 %v4867_v23, %v4865_v14 }
  0xc7   :  { %v4175_v7 = vpack.c.bf16 %v4986_v63, %v4984_v62 }
  0xc8   :  { %v4976_v59 = vpack.c.bf16 %v739_v58, %v736_v55  ;;  %v4991_v2 = vsub.f32 %v2684_v31, %v739_v58  ;;  %v857_v31 = vsub.f32 %v4867_v23, %v5880_v18  ;;  %v851_v55 = vand.u32 4294901760, %v850_v45 }
  0xc9   :  { %v879_v49 = vand.u32 4294901760, %v878_v30  ;;  %v900_v45 = vand.u32 4294901760, %v899_v54  ;;  %v5092_v54 = vld [vmem:[%s5872_s2] sm:$0xff] }
  0xca   :  { %4131 = vmatpush3.bf16.msra.mxu1 %v4976_v59  ;;  %v858_v58 = vand.u32 4294901760, %v857_v31  ;;  %v5876_v11 = vand.u32 4294901760, %v4991_v2  ;;  %v4178_v30 = vpack.c.bf16 %v4991_v2, %v4989_v1 }
  0xcb   :  { %4132 = vmatprep.subr.bf16.mxu1 %v4591_v0  ;;  %v4157_v31 = vpack.c.bf16 %v900_v45, %v893_v12 }
  0xcc   :  { %v4148_v3 = vpack.c.bf16 %v858_v58, %v851_v55  ;;  %v885_v40 = vsub.f32 %v4991_v2, %v5876_v11  ;;  %v4160_v55 = vpack.c.bf16 %v4841_v47, %v4839_v46  ;;  %v4163_v58 = vpack.c.bf16 %v4852_v56, %v4843_v48 }
  0xcd   :  { %v5908_v46 = vand.u32 4294901760, %v4854_v19  ;;  %v5909_v47 = vand.u32 4294901760, %v4857_v20  ;;  %v5911_v48 = vand.u32 4294901760, %v4863_v44  ;;  %v5914_v19 = vand.u32 4294901760, %v4984_v62 }
  0xce   :  { %4134 = vmatpush3.bf16.msra.mxu1 %v4996_v34  ;;  %v886_v21 = vand.u32 4294901760, %v885_v40  ;;  %v4181_v40 = vpack.c.bf16 %v5000_v36, %v4998_v35  ;;  %v5915_v20 = vand.u32 4294901760, %v4986_v63  ;;  %v5917_v44 = vand.u32 4294901760, %v4991_v2  ;;  %v2701_v2 = vld [vmem:[%s5870_s1 + $0x170] sm:$0xff] }
  0xcf   :  { %4135 = vmatprep.subr.bf16.mxu1 %v4591_v0 }
  0xd0   :  { %v4154_v50 = vpack.c.bf16 %v886_v21, %v879_v49  ;;  %v32_v49 = vlaneseq }
  0xd2   :  { %v5086_v21 = vshrl.u32 %v32_v49, 7 }
  0xd4   :  { %v34_v52 = vsub.s32 0, %v5086_v21 }
  0xd6   :  { %v35_v12 = vrot.slane %v5092_v54, %v34_v52  ;;  %v2695_v52 = vld [vmem:[%s5870_s1 + $0x140] sm:$0xff] }
 0x198   :  { %v673_v45 = vpop.f32.mrb[0].mxu0 }
 0x199   :  { %v4543_v6 = vadd.f32 %v673_v45, %v35_v12  ;;  %v3336_v57 = vpop.f32.mrb[1].mxu0 }
 0x19b   :  { %v677_v11 = vmax.f32 %v4543_v6, 0.0 }
 0x19d   :  { %v5095_v10 = vand.u32 4294901760, %v677_v11 }
 0x19f   :  { %v5098_v61 = vsub.f32 %v677_v11, %v5095_v10  ;;  %v2691_v11 = vld [vmem:[%s5870_s1 + $0x120] sm:$0xff] }
 0x1a0   :  { %v1375_v6 = vand.u32 4294901760, %v2691_v11 }
 0x1a1   :  { %v782_v49 = vand.u32 4294901760, %v5098_v61 }
 0x1a2   :  { %v5162_v9 = vsub.f32 %v2691_v11, %v1375_v6 }
 0x1a3   :  { %v783_v60 = vsub.f32 %v5098_v61, %v782_v49 }
 0x1a5   :  { %v784_v18 = vand.u32 4294901760, %v783_v60  ;;  %v2690_v60 = vld [vmem:[%s5870_s1 + $0x118] sm:$0xff] }
 0x1a6   :  { %v1372_v57 = vand.u32 4294901760, %v2690_v60 }
 0x1a7   :  { %3370 = vmatmul.mubr.f32.vlgmr.msra.gmra.mrb[0].mxu1 %v784_v18 }
 0x1a8   :  { %4137 = vmatpush3.bf16.msra.mxu1 %v5018_v42  ;;  %3404 = vmatprep.mubr.msk.f32.mxu1 %vm4592_vm0, %v4593_v4  ;;  %v2687_v42 = vld [vmem:[%s5870_s1 + $0x100] sm:$0xff]  ;;  %v5160_v15 = vsub.f32 %v2690_v60, %v1372_v57 }
 0x1a9   :  { %4138 = vmatprep.subr.bf16.mxu1 %v4591_v0  ;;  %v1363_v18 = vand.u32 4294901760, %v2687_v42 }
 0x1ab   :  { %v5149_v45 = vsub.f32 %v2687_v42, %v1363_v18 }
 0x1ac   :  { %4140 = vmatpush3.bf16.msra.mxu1 %v5022_v17  ;;  %v2688_v17 = vld [vmem:[%s5870_s1 + $0x108] sm:$0xff] }
 0x1ad   :  { %4141 = vmatprep.subr.bf16.mxu1 %v4591_v0 }
 0x1b0   :  { %4143 = vmatpush3.bf16.msra.mxu1 %v4142_v24  ;;  %v2689_v24 = vld [vmem:[%s5870_s1 + $0x110] sm:$0xff] }
 0x1b1   :  { %4144 = vmatprep.subr.bf16.mxu1 %v4591_v0 }
 0x1b4   :  { %4146 = vmatpush3.bf16.msra.mxu1 %v4145_v26  ;;  %v1366_v26 = vand.u32 4294901760, %v2688_v17 }
 0x1b5   :  { %4147 = vmatprep.subr.bf16.mxu1 %v4591_v0 }
 0x1b6   :  { %v5147_v12 = vpack.c.bf16 %v1366_v26, %v1363_v18  ;;  %v5151_v13 = vsub.f32 %v2688_v17, %v1366_v26  ;;  %v1387_v18 = vand.u32 4294901760, %v2695_v52  ;;  %v1390_v26 = vand.u32 4294901760, %v2696_v22 }
 0x1b8   :  { %4149 = vmatpush3.bf16.msra.mxu1 %v4148_v3  ;;  %v1369_v3 = vand.u32 4294901760, %v2689_v24  ;;  %4257 = vmatpush3.bf16.msra.mxu0 %v5147_v12  ;;  %v5176_v11 = vsub.f32 %v2695_v52, %v1387_v18 }
 0x1b9   :  { %4150 = vmatprep.subr.bf16.mxu1 %v4591_v0  ;;  %4258 = vmatprep.subr.bf16.mxu0 %v4591_v0 }
 0x1ba   :  { %v5153_v27 = vsub.f32 %v2689_v24, %v1369_v3  ;;  %v5158_v41 = vpack.c.bf16 %v1372_v57, %v1369_v3  ;;  %v5178_v57 = vsub.f32 %v2696_v22, %v1390_v26 }
 0x1bc   :  { %4152 = vmatpush3.bf16.msra.mxu1 %v4151_v33  ;;  %v2692_v33 = vld [vmem:[%s5870_s1 + $0x128] sm:$0xff]  ;;  %4260 = vmatpush3.bf16.msra.mxu0 %v5158_v41 }
 0x1bd   :  { %4153 = vmatprep.subr.bf16.mxu1 %v4591_v0  ;;  %4261 = vmatprep.subr.bf16.mxu0 %v4591_v0 }
 0x1c0   :  { %4155 = vmatpush3.bf16.msra.mxu1 %v4154_v50  ;;  %v1378_v50 = vand.u32 4294901760, %v2692_v33 }
 0x1c1   :  { %4156 = vmatprep.subr.bf16.mxu1 %v4591_v0 }
 0x1c2   :  { %v5168_v42 = vsub.f32 %v2692_v33, %v1378_v50 }
 0x1c4   :  { %4158 = vmatpush3.bf16.msra.mxu1 %v4157_v31  ;;  %v2693_v31 = vld [vmem:[%s5870_s1 + $0x130] sm:$0xff] }
 0x1c5   :  { %4159 = vmatprep.subr.bf16.mxu1 %v4591_v0  ;;  %v1381_v17 = vand.u32 4294901760, %v2693_v31 }
 0x1c7   :  { %3405 = vmatmul.mubr.f32.vlgmr.msra.gmra.mrb[0].mxu1 %v5095_v10  ;;  %v5172_v60 = vsub.f32 %v2693_v31, %v1381_v17 }
 0x1c8   :  { %4161 = vmatpush3.bf16.msra.mxu1 %v4160_v55  ;;  %3439 = vmatprep.mubr.msk.f32.mxu1 %vm4592_vm0, %v4593_v4  ;;  %v2694_v55 = vld [vmem:[%s5870_s1 + $0x138] sm:$0xff] }
 0x1c9   :  { %4162 = vmatprep.subr.bf16.mxu1 %v4591_v0  ;;  %v1384_v24 = vand.u32 4294901760, %v2694_v55 }
 0x1cb   :  { %v5174_v3 = vsub.f32 %v2694_v55, %v1384_v24  ;;  %v5192_v22 = vpack.c.bf16 %v1384_v24, %v1381_v17 }
 0x1cc   :  { %4164 = vmatpush3.bf16.msra.mxu1 %v4163_v58  ;;  %v5184_v58 = vpack.c.bf16 %v1378_v50, %v1375_v6  ;;  %v1463_v6 = vand.u32 4294901760, %v5151_v13 }
 0x1cd   :  { %4165 = vmatprep.subr.bf16.mxu1 %v4591_v0 }
 0x1ce   :  { %4263 = vmatpush3.bf16.msra.mxu0 %v5184_v58  ;;  %v1464_v55 = vsub.f32 %v5151_v13, %v1463_v6 }
 0x1cf   :  { %4264 = vmatprep.subr.bf16.mxu0 %v4591_v0 }
 0x1d0   :  { %4167 = vmatpush3.bf16.msra.mxu1 %v4166_v28  ;;  %v5200_v28 = vpack.c.bf16 %v1390_v26, %v1387_v18 }
 0x1d1   :  { %4168 = vmatprep.subr.bf16.mxu1 %v4591_v0 }
 0x1d2   :  { %4266 = vmatpush3.bf16.msra.mxu0 %v5192_v22 }
 0x1d3   :  { %4267 = vmatprep.subr.bf16.mxu0 %v4591_v0 }
 0x1d4   :  { %4170 = vmatpush3.bf16.msra.mxu1 %v4169_v37  ;;  %v4208_v37 = vpack.c.bf16 %v800_v32, %v793_v29  ;;  %v4214_v29 = vpack.c.bf16 %v5909_v47, %v5908_v46  ;;  %v5910_v32 = vand.u32 4294901760, %v4861_v43  ;;  %v5916_v43 = vand.u32 4294901760, %v4989_v1 }
 0x1d5   :  { %4171 = vmatprep.subr.bf16.mxu1 %v4591_v0  ;;  %v1470_v46 = vand.u32 4294901760, %v5153_v27  ;;  %v5899_v47 = vand.u32 4294901760, %v5160_v15 }
 0x1d6   :  { %4269 = vmatpush3.bf16.msra.mxu0 %v5200_v28 }
 0x1d7   :  { %4270 = vmatprep.subr.bf16.mxu0 %v4591_v0 }
 0x1d8   :  { %4173 = vmatpush3.bf16.msra.mxu1 %v4172_v39  ;;  %v5907_v39 = vand.u32 4294901760, %v4852_v56  ;;  %v4217_v56 = vpack.c.bf16 %v5911_v48, %v5910_v32  ;;  %v1471_v32 = vsub.f32 %v5153_v27, %v1470_v46  ;;  %v1478_v48 = vsub.f32 %v5160_v15, %v5899_v47 }
 0x1d9   :  { %4174 = vmatprep.subr.bf16.mxu1 %v4591_v0 }
 0x1dc   :  { %4176 = vmatpush3.bf16.msra.mxu1 %v4175_v7  ;;  %v4211_v7 = vpack.c.bf16 %v5907_v39, %v807_v8  ;;  %v5912_v8 = vand.u32 4294901760, %v4865_v14  ;;  %v5918_v14 = vand.u32 4294901760, %v4998_v35  ;;  %v1405_v35 = vand.u32 4294901760, %v2701_v2 }
 0x1dd   :  { %4177 = vmatprep.subr.bf16.mxu1 %v4591_v0 }
 0x1de   :  { %v5348_v26 = vsub.f32 %v2701_v2, %v1405_v35 }
 0x1e0   :  { %4179 = vmatpush3.bf16.msra.mxu1 %v4178_v30 }
 0x1e1   :  { %4180 = vmatprep.subr.bf16.mxu1 %v4591_v0 }
 0x1e4   :  { %4182 = vmatpush3.bf16.msra.mxu1 %v4181_v40  ;;  %v4223_v40 = vpack.c.bf16 %v5915_v20, %v5914_v19 }
 0x1e5   :  { %4183 = vmatprep.subr.bf16.mxu1 %v4591_v0 }
 0x1e7   :  { %3440 = vmatmul.mubr.f32.vlgmr.msra.gmra.mrb[0].mxu1 %v5098_v61  ;;  %v5913_v61 = vand.u32 4294901760, %v4867_v23  ;;  %v5919_v23 = vand.u32 4294901760, %v5000_v36 }
 0x1e8   :  { %4185 = vmatpush3.bf16.msra.mxu1 %v4837_v16  ;;  %3474 = vmatprep.mubr.msk.f32.mxu1 %vm4592_vm0, %v4593_v4 }
 0x1e9   :  { %4186 = vmatprep.subr.bf16.mxu1 %v4591_v0  ;;  %v4220_v30 = vpack.c.bf16 %v5913_v61, %v5912_v8  ;;  %v4229_v33 = vpack.c.bf16 %v5919_v23, %v5918_v14  ;;  %v5897_v8 = vand.u32 4294901760, %v5168_v42  ;;  %v1472_v61 = vand.u32 4294901760, %v1471_v32 }
 0x1ea   :  { %v5895_v14 = vand.u32 4294901760, %v5174_v3 }
 0x1eb   :  { %v1492_v20 = vsub.f32 %v5168_v42, %v5897_v8 }
 0x1ec   :  { %4188 = vmatpush3.bf16.msra.mxu1 %v4850_v53 }
 0x1ed   :  { %4189 = vmatprep.subr.bf16.mxu1 %v4591_v0 }
 0x1f0   :  { %4191 = vmatpush3.bf16.msra.mxu1 %v4872_v5 }
 0x1f1   :  { %4192 = vmatprep.subr.bf16.mxu1 %v4591_v0 }
 0x1f4   :  { %4194 = vmatpush3.bf16.msra.mxu1 %v4879_v25 }
 0x1f5   :  { %4195 = vmatprep.subr.bf16.mxu1 %v4591_v0 }
 0x1f8   :  { %4197 = vmatpush3.bf16.msra.mxu1 %v4886_v51 }
 0x1f9   :  { %4198 = vmatprep.subr.bf16.mxu1 %v4591_v0 }
 0x1fc   :  { %4200 = vmatpush3.bf16.msra.mxu1 %v4966_v38 }
 0x1fd   :  { %4201 = vmatprep.subr.bf16.mxu1 %v4591_v0 }
 0x200   :  { %4203 = vmatpush3.bf16.msra.mxu1 %v4976_v59 }
 0x201   :  { %4204 = vmatprep.subr.bf16.mxu1 %v4591_v0 }
 0x204   :  { %4206 = vmatpush3.bf16.msra.mxu1 %v4996_v34 }
 0x205   :  { %4207 = vmatprep.subr.bf16.mxu1 %v4591_v0 }
 0x207   :  { %3475 = vmatmul.mubr.f32.vlgmr.msra.gmra.mrb[0].mxu1 %v782_v49  ;;  %v4226_v49 = vpack.c.bf16 %v5917_v44, %v5916_v43  ;;  %v1493_v44 = vand.u32 4294901760, %v1492_v20 }
 0x208   :  { %4209 = vmatpush3.bf16.msra.mxu1 %v4208_v37  ;;  %3509 = vmatprep.mubr.msk.f32.mxu1 %vm4592_vm0, %v4593_v4 }
 0x209   :  { %4210 = vmatprep.subr.bf16.mxu1 %v4591_v0 }
 0x20c   :  { %4212 = vmatpush3.bf16.msra.mxu1 %v4211_v7  ;;  %v1465_v7 = vand.u32 4294901760, %v1464_v55 }
 0x20d   :  { %4213 = vmatprep.subr.bf16.mxu1 %v4591_v0 }
 0x210   :  { %4215 = vmatpush3.bf16.msra.mxu1 %v4214_v29 }
 0x211   :  { %4216 = vmatprep.subr.bf16.mxu1 %v4591_v0 }
 0x214   :  { %4218 = vmatpush3.bf16.msra.mxu1 %v4217_v56  ;;  %v5898_v56 = vand.u32 4294901760, %v5162_v9 }
 0x215   :  { %4219 = vmatprep.subr.bf16.mxu1 %v4591_v0 }
 0x216   :  { %v1485_v19 = vsub.f32 %v5162_v9, %v5898_v56 }
 0x218   :  { %4221 = vmatpush3.bf16.msra.mxu1 %v4220_v30  ;;  %v1479_v30 = vand.u32 4294901760, %v1478_v48  ;;  %v1486_v43 = vand.u32 4294901760, %v1485_v19 }
 0x219   :  { %4222 = vmatprep.subr.bf16.mxu1 %v4591_v0 }
 0x21a   :  { %v4286_v23 = vpack.c.bf16 %v1493_v44, %v1486_v43 }
 0x21c   :  { %4224 = vmatpush3.bf16.msra.mxu1 %v4223_v40  ;;  %v4283_v40 = vpack.c.bf16 %v1479_v30, %v1472_v61 }
 0x21d   :  { %4225 = vmatprep.subr.bf16.mxu1 %v4591_v0 }
 0x220   :  { %4227 = vmatpush3.bf16.msra.mxu1 %v4226_v49  ;;  %v5896_v49 = vand.u32 4294901760, %v5172_v60 }
 0x221   :  { %4228 = vmatprep.subr.bf16.mxu1 %v4591_v0 }
 0x224   :  { %4230 = vmatpush3.bf16.msra.mxu1 %v4229_v33  ;;  %v1499_v33 = vsub.f32 %v5172_v60, %v5896_v49  ;;  %v2712_v49 = vld [vmem:[%s5870_s1 + $0x1c8] sm:$0xff] }
 0x225   :  { %4231 = vmatprep.subr.bf16.mxu1 %v4591_v0 }
 0x227   :  { %3510 = vmatmul.mubr.f32.vlgmr.msra.gmra.mrb[0].mxu1 %v5095_v10 }
 0x228   :  { %4233 = vmatpush3.bf16.msra.mxu1 %v4837_v16  ;;  %3544 = vmatprep.mubr.msk.f32.mxu1 %vm4592_vm0, %v4593_v4  ;;  %v2697_v16 = vld [vmem:[%s5870_s1 + $0x150] sm:$0xff] }
 0x229   :  { %4234 = vmatprep.subr.bf16.mxu1 %v4591_v0 }
 0x22c   :  { %4236 = vmatpush3.bf16.msra.mxu1 %v4850_v53  ;;  %v2698_v53 = vld [vmem:[%s5870_s1 + $0x158] sm:$0xff] }
 0x22d   :  { %4237 = vmatprep.subr.bf16.mxu1 %v4591_v0 }
 0x230   :  { %4239 = vmatpush3.bf16.msra.mxu1 %v4872_v5  ;;  %v1393_v5 = vand.u32 4294901760, %v2697_v16 }
 0x231   :  { %4240 = vmatprep.subr.bf16.mxu1 %v4591_v0 }
 0x232   :  { %v5339_v52 = vsub.f32 %v2697_v16, %v1393_v5  ;;  %v1506_v16 = vsub.f32 %v5174_v3, %v5895_v14 }
 0x234   :  { %4242 = vmatpush3.bf16.msra.mxu1 %v4879_v25  ;;  %v1396_v25 = vand.u32 4294901760, %v2698_v53 }
 0x235   :  { %4243 = vmatprep.subr.bf16.mxu1 %v4591_v0 }
 0x236   :  { %v5341_v17 = vsub.f32 %v2698_v53, %v1396_v25  ;;  %v1500_v53 = vand.u32 4294901760, %v1499_v33  ;;  %v5888_v33 = vand.u32 4294901760, %v5348_v26 }
 0x238   :  { %4245 = vmatpush3.bf16.msra.mxu1 %v4886_v51  ;;  %v5309_v51 = vpack.c.bf16 %v1396_v25, %v1393_v5  ;;  %v1507_v5 = vand.u32 4294901760, %v1506_v16  ;;  %v5894_v25 = vand.u32 4294901760, %v5176_v11 }
 0x239   :  { %4246 = vmatprep.subr.bf16.mxu1 %v4591_v0 }
 0x23a   :  { %4272 = vmatpush3.bf16.msra.mxu0 %v5309_v51 }
 0x23b   :  { %4273 = vmatprep.subr.bf16.mxu0 %v4591_v0 }
 0x23c   :  { %4248 = vmatpush3.bf16.msra.mxu1 %v4966_v38  ;;  %v2699_v38 = vld [vmem:[%s5870_s1 + $0x160] sm:$0xff] }
 0x23d   :  { %4249 = vmatprep.subr.bf16.mxu1 %v4591_v0  ;;  %v1399_v62 = vand.u32 4294901760, %v2699_v38 }
 0x23f   :  { %v5343_v24 = vsub.f32 %v2699_v38, %v1399_v62  ;;  %v5893_v38 = vand.u32 4294901760, %v5178_v57 }
 0x240   :  { %4251 = vmatpush3.bf16.msra.mxu1 %v4976_v59  ;;  %v2700_v59 = vld [vmem:[%s5870_s1 + $0x168] sm:$0xff] }
 0x241   :  { %4252 = vmatprep.subr.bf16.mxu1 %v4591_v0  ;;  %v1402_v63 = vand.u32 4294901760, %v2700_v59  ;;  %v5890_v48 = vand.u32 4294901760, %v5343_v24 }
 0x243   :  { %v5319_v1 = vpack.c.bf16 %v1402_v63, %v1399_v62  ;;  %v5345_v18 = vsub.f32 %v2700_v59, %v1402_v63  ;;  %v4289_v59 = vpack.c.bf16 %v1507_v5, %v1500_v53  ;;  %v1513_v62 = vsub.f32 %v5176_v11, %v5894_v25 }
 0x244   :  { %4254 = vmatpush3.bf16.msra.mxu1 %v4996_v34  ;;  %v2702_v34 = vld [vmem:[%s5870_s1 + $0x178] sm:$0xff]  ;;  %v1520_v63 = vsub.f32 %v5178_v57, %v5893_v38  ;;  %v1541_v19 = vsub.f32 %v5343_v24, %v5890_v48  ;;  %v1555_v5 = vsub.f32 %v5348_v26, %v5888_v33 }
 0x245   :  { %4399 = vmatprep.subr.bf16.mxu1 %v4591_v0  ;;  %4275 = vmatpush3.bf16.msra.mxu0 %v5319_v1  ;;  %v1408_v36 = vand.u32 4294901760, %v2702_v34  ;;  %v1514_v2 = vand.u32 4294901760, %v1513_v62  ;;  %v5889_v61 = vand.u32 4294901760, %v5345_v18 }
 0x246   :  { %4276 = vmatprep.subr.bf16.mxu0 %v4591_v0  ;;  %v1542_v43 = vand.u32 4294901760, %v1541_v19  ;;  %v4316_v19 = vpack.c.bf16 %v5178_v57, %v5176_v11 }
 0x247   :  { %3545 = vmatmul.mubr.f32.vlgmr.msra.gmra.mrb[0].mxu1 %v5095_v10  ;;  %v1456_v10 = vand.u32 4294901760, %v5149_v45  ;;  %v5331_v50 = vpack.c.bf16 %v1408_v36, %v1405_v35  ;;  %v5350_v37 = vsub.f32 %v2702_v34, %v1408_v36  ;;  %v1521_v34 = vand.u32 4294901760, %v1520_v63 }
 0x248   :  { %3789 = vmatprep.mubr.msk.f32.mxu1 %vm4592_vm0, %v4593_v4  ;;  %v5892_v35 = vand.u32 4294901760, %v5339_v52  ;;  %v5891_v36 = vand.u32 4294901760, %v5341_v17  ;;  %v1548_v20 = vsub.f32 %v5345_v18, %v5889_v61  ;;  %v1556_v63 = vand.u32 4294901760, %v1555_v5 }
 0x249   :  { %v1457_v31 = vsub.f32 %v5149_v45, %v1456_v10  ;;  %4278 = vmatpush3.bf16.msra.mxu0 %v5331_v50  ;;  %v5887_v16 = vand.u32 4294901760, %v5350_v37  ;;  %v697_v5 = vsub.s32 1, %v5086_v21 }
 0x24a   :  { %4279 = vmatprep.subr.bf16.mxu0 %v4591_v0  ;;  %v1527_v55 = vsub.f32 %v5339_v52, %v5892_v35  ;;  %v1549_v44 = vand.u32 4294901760, %v1548_v20  ;;  %v4319_v20 = vpack.c.bf16 %v5341_v17, %v5339_v52 }
 0x24b   :  { %v1458_v39 = vand.u32 4294901760, %v1457_v31  ;;  %v4292_v31 = vpack.c.bf16 %v1521_v34, %v1514_v2  ;;  %v1562_v62 = vsub.f32 %v5350_v37, %v5887_v16 }
 0x24c   :  { %v4298_v53 = vpack.c.bf16 %v1549_v44, %v1542_v43  ;;  %v4322_v43 = vpack.c.bf16 %v5345_v18, %v5343_v24  ;;  %v4325_v44 = vpack.c.bf16 %v5350_v37, %v5348_v26 }
 0x24d   :  { %v5355_v29 = vpack.c.bf16 %v1465_v7, %v1458_v39  ;;  %v1534_v39 = vsub.f32 %v5341_v17, %v5891_v36  ;;  %v1528_v7 = vand.u32 4294901760, %v1527_v55  ;;  %v1563_v2 = vand.u32 4294901760, %v1562_v62 }
 0x24e   :  { %v4304_v55 = vpack.c.bf16 %v5151_v13, %v5149_v45  ;;  %v698_v62 = vrot.slane %v5092_v54, %v697_v5  ;;  %v2710_v5 = vld [vmem:[%s5870_s1 + $0x1b8] sm:$0xff]  ;;  %v5921_v13 = vand.u32 4294901760, %v5162_v9  ;;  %v5922_v45 = vand.u32 4294901760, %v5168_v42 }
 0x24f   :  { %v1535_v32 = vand.u32 4294901760, %v1534_v39  ;;  %v4301_v34 = vpack.c.bf16 %v1563_v2, %v1556_v63  ;;  %v4307_v39 = vpack.c.bf16 %v5160_v15, %v5153_v27  ;;  %v5924_v27 = vand.u32 4294901760, %v5174_v3 }
 0x251   :  { %v4295_v30 = vpack.c.bf16 %v1535_v32, %v1528_v7  ;;  %v4310_v7 = vpack.c.bf16 %v5168_v42, %v5162_v9  ;;  %v4313_v32 = vpack.c.bf16 %v5174_v3, %v5172_v60  ;;  %v5927_v9 = vand.u32 4294901760, %v5339_v52 }
 0x252   :  { %v5928_v42 = vand.u32 4294901760, %v5341_v17  ;;  %v5930_v3 = vand.u32 4294901760, %v5345_v18  ;;  %v2718_v18 = vld [vmem:[%s5870_s1 + $0x1f8] sm:$0xff] }
 0x31a   :  { %v1336_v63 = vpop.f32.mrb[0].mxu1 }
 0x31b   :  { %v4544_v2 = vadd.f32 %v1336_v63, %v698_v62  ;;  %v3546_v16 = vpop.f32.mrb[1].mxu1  ;;  %v2711_v62 = vld [vmem:[%s5870_s1 + $0x1c0] sm:$0xff] }
 0x31d   :  { %v1340_v33 = vmax.f32 %v4544_v2, 0.0 }
 0x31f   :  { %v5429_v61 = vand.u32 4294901760, %v1340_v33 }
 0x321   :  { %v5432_v48 = vsub.f32 %v1340_v33, %v5429_v61  ;;  %v2708_v33 = vld [vmem:[%s5870_s1 + $0x1a8] sm:$0xff] }
 0x323   :  { %v1445_v36 = vand.u32 4294901760, %v5432_v48 }
 0x325   :  { %v1446_v35 = vsub.f32 %v5432_v48, %v1445_v36 }
 0x327   :  { %v1447_v38 = vand.u32 4294901760, %v1446_v35  ;;  %v2706_v35 = vld [vmem:[%s5870_s1 + $0x198] sm:$0xff] }
 0x328   :  { %v2035_v16 = vand.u32 4294901760, %v2706_v35 }
 0x329   :  { %3580 = vmatmul.mubr.f32.vlgmr.msra.gmra.mrb[2].mxu0 %v1447_v38 }
 0x32a   :  { %4281 = vmatpush3.bf16.msra.mxu0 %v5355_v29  ;;  %3614 = vmatprep.mubr.msk.f32.mxu0 %vm4592_vm0, %v4593_v4  ;;  %v2703_v29 = vld [vmem:[%s5870_s1 + $0x180] sm:$0xff]  ;;  %v5493_v56 = vsub.f32 %v2706_v35, %v2035_v16 }
 0x32b   :  { %4282 = vmatprep.subr.bf16.mxu0 %v4591_v0  ;;  %v2026_v38 = vand.u32 4294901760, %v2703_v29 }
 0x32d   :  { %v5482_v2 = vsub.f32 %v2703_v29, %v2026_v38 }
 0x32e   :  { %4284 = vmatpush3.bf16.msra.mxu0 %v4283_v40  ;;  %v2704_v40 = vld [vmem:[%s5870_s1 + $0x188] sm:$0xff] }
 0x32f   :  { %4285 = vmatprep.subr.bf16.mxu0 %v4591_v0 }
 0x332   :  { %4287 = vmatpush3.bf16.msra.mxu0 %v4286_v23  ;;  %v2705_v23 = vld [vmem:[%s5870_s1 + $0x190] sm:$0xff] }
 0x333   :  { %4288 = vmatprep.subr.bf16.mxu0 %v4591_v0 }
 0x336   :  { %4290 = vmatpush3.bf16.msra.mxu0 %v4289_v59  ;;  %v2029_v59 = vand.u32 4294901760, %v2704_v40 }
 0x337   :  { %4291 = vmatprep.subr.bf16.mxu0 %v4591_v0 }
 0x338   :  { %v5480_v63 = vpack.c.bf16 %v2029_v59, %v2026_v38  ;;  %v5484_v25 = vsub.f32 %v2704_v40, %v2029_v59  ;;  %v2050_v38 = vand.u32 4294901760, %v2711_v62  ;;  %v2053_v59 = vand.u32 4294901760, %v2712_v49 }
 0x33a   :  { %4293 = vmatpush3.bf16.msra.mxu0 %v4292_v31  ;;  %v2032_v31 = vand.u32 4294901760, %v2705_v23  ;;  %4401 = vmatpush3.bf16.msra.mxu1 %v5480_v63 }
 0x33b   :  { %4294 = vmatprep.subr.bf16.mxu0 %v4591_v0  ;;  %4402 = vmatprep.subr.bf16.mxu1 %v4591_v0 }
 0x33c   :  { %v5486_v14 = vsub.f32 %v2705_v23, %v2032_v31  ;;  %v5491_v8 = vpack.c.bf16 %v2035_v16, %v2032_v31  ;;  %v2047_v23 = vand.u32 4294901760, %v2710_v5  ;;  %v5511_v16 = vsub.f32 %v2712_v49, %v2053_v59 }
 0x33e   :  { %4296 = vmatpush3.bf16.msra.mxu0 %v4295_v30  ;;  %v2707_v30 = vld [vmem:[%s5870_s1 + $0x1a0] sm:$0xff]  ;;  %v5507_v31 = vsub.f32 %v2710_v5, %v2047_v23  ;;  %4404 = vmatpush3.bf16.msra.mxu1 %v5491_v8 }
 0x33f   :  { %4297 = vmatprep.subr.bf16.mxu0 %v4591_v0  ;;  %4405 = vmatprep.subr.bf16.mxu1 %v4591_v0 }
 0x342   :  { %4299 = vmatpush3.bf16.msra.mxu0 %v4298_v53  ;;  %v2038_v53 = vand.u32 4294901760, %v2707_v30 }
 0x343   :  { %4300 = vmatprep.subr.bf16.mxu0 %v4591_v0 }
 0x344   :  { %v5495_v47 = vsub.f32 %v2707_v30, %v2038_v53  ;;  %v5509_v30 = vsub.f32 %v2711_v62, %v2050_v38 }
 0x346   :  { %4302 = vmatpush3.bf16.msra.mxu0 %v4301_v34  ;;  %v2041_v34 = vand.u32 4294901760, %v2708_v33 }
 0x347   :  { %4303 = vmatprep.subr.bf16.mxu0 %v4591_v0 }
 0x348   :  { %v5501_v29 = vsub.f32 %v2708_v33, %v2041_v34 }
 0x349   :  { %3615 = vmatmul.mubr.f32.vlgmr.msra.gmra.mrb[2].mxu0 %v5429_v61 }
 0x34a   :  { %4305 = vmatpush3.bf16.msra.mxu0 %v4304_v55  ;;  %3649 = vmatprep.mubr.msk.f32.mxu0 %vm4592_vm0, %v4593_v4  ;;  %v2709_v55 = vld [vmem:[%s5870_s1 + $0x1b0] sm:$0xff] }
 0x34b   :  { %4306 = vmatprep.subr.bf16.mxu0 %v4591_v0  ;;  %v2044_v40 = vand.u32 4294901760, %v2709_v55 }
 0x34d   :  { %v5505_v35 = vsub.f32 %v2709_v55, %v2044_v40  ;;  %v5525_v49 = vpack.c.bf16 %v2047_v23, %v2044_v40 }
 0x34e   :  { %4308 = vmatpush3.bf16.msra.mxu0 %v4307_v39  ;;  %v5517_v39 = vpack.c.bf16 %v2041_v34, %v2038_v53  ;;  %v2126_v53 = vand.u32 4294901760, %v5484_v25 }
 0x34f   :  { %4309 = vmatprep.subr.bf16.mxu0 %v4591_v0 }
 0x350   :  { %4407 = vmatpush3.bf16.msra.mxu1 %v5517_v39  ;;  %v2127_v5 = vsub.f32 %v5484_v25, %v2126_v53 }
 0x351   :  { %4408 = vmatprep.subr.bf16.mxu1 %v4591_v0 }
 0x352   :  { %4311 = vmatpush3.bf16.msra.mxu0 %v4310_v7  ;;  %v5533_v7 = vpack.c.bf16 %v2053_v59, %v2050_v38 }
 0x353   :  { %4312 = vmatprep.subr.bf16.mxu0 %v4591_v0 }
 0x354   :  { %4410 = vmatpush3.bf16.msra.mxu1 %v5525_v49 }
 0x355   :  { %4411 = vmatprep.subr.bf16.mxu1 %v4591_v0 }
 0x356   :  { %4314 = vmatpush3.bf16.msra.mxu0 %v4313_v32  ;;  %v4352_v32 = vpack.c.bf16 %v1463_v6, %v1456_v10  ;;  %v4358_v10 = vpack.c.bf16 %v5922_v45, %v5921_v13  ;;  %v5923_v6 = vand.u32 4294901760, %v5172_v60  ;;  %v5929_v60 = vand.u32 4294901760, %v5343_v24  ;;  %v2717_v24 = vld [vmem:[%s5870_s1 + $0x1f0] sm:$0xff] }
 0x357   :  { %4315 = vmatprep.subr.bf16.mxu0 %v4591_v0  ;;  %v2133_v13 = vand.u32 4294901760, %v5486_v14  ;;  %v2140_v45 = vand.u32 4294901760, %v5493_v56 }
 0x358   :  { %4413 = vmatpush3.bf16.msra.mxu1 %v5533_v7 }
 0x359   :  { %4414 = vmatprep.subr.bf16.mxu1 %v4591_v0 }
 0x35a   :  { %4317 = vmatpush3.bf16.msra.mxu0 %v4316_v19  ;;  %v5920_v19 = vand.u32 4294901760, %v5160_v15  ;;  %v4361_v15 = vpack.c.bf16 %v5924_v27, %v5923_v6  ;;  %v2134_v6 = vsub.f32 %v5486_v14, %v2133_v13  ;;  %v2141_v27 = vsub.f32 %v5493_v56, %v2140_v45 }
 0x35b   :  { %4318 = vmatprep.subr.bf16.mxu0 %v4591_v0 }
 0x35e   :  { %4320 = vmatpush3.bf16.msra.mxu0 %v4319_v20  ;;  %v4355_v20 = vpack.c.bf16 %v5920_v19, %v1470_v46  ;;  %v5925_v46 = vand.u32 4294901760, %v5176_v11  ;;  %v5931_v11 = vand.u32 4294901760, %v5348_v26  ;;  %v2068_v26 = vand.u32 4294901760, %v2717_v24 }
 0x35f   :  { %4321 = vmatprep.subr.bf16.mxu0 %v4591_v0 }
 0x360   :  { %v5678_v59 = vsub.f32 %v2717_v24, %v2068_v26 }
 0x362   :  { %4323 = vmatpush3.bf16.msra.mxu0 %v4322_v43  ;;  %v4367_v43 = vpack.c.bf16 %v5928_v42, %v5927_v9 }
 0x363   :  { %4324 = vmatprep.subr.bf16.mxu0 %v4591_v0 }
 0x366   :  { %4326 = vmatpush3.bf16.msra.mxu0 %v4325_v44  ;;  %v4370_v44 = vpack.c.bf16 %v5930_v3, %v5929_v60 }
 0x367   :  { %4327 = vmatprep.subr.bf16.mxu0 %v4591_v0 }
 0x369   :  { %3650 = vmatmul.mubr.f32.vlgmr.msra.gmra.mrb[2].mxu0 %v5432_v48 }
 0x36a   :  { %4329 = vmatpush3.bf16.msra.mxu0 %v5147_v12  ;;  %3684 = vmatprep.mubr.msk.f32.mxu0 %vm4592_vm0, %v4593_v4 }
 0x36b   :  { %4330 = vmatprep.subr.bf16.mxu0 %v4591_v0 }
 0x36e   :  { %4332 = vmatpush3.bf16.msra.mxu0 %v5158_v41 }
 0x36f   :  { %4333 = vmatprep.subr.bf16.mxu0 %v4591_v0 }
 0x372   :  { %4335 = vmatpush3.bf16.msra.mxu0 %v5184_v58 }
 0x373   :  { %4336 = vmatprep.subr.bf16.mxu0 %v4591_v0 }
 0x376   :  { %4338 = vmatpush3.bf16.msra.mxu0 %v5192_v22 }
 0x377   :  { %4339 = vmatprep.subr.bf16.mxu0 %v4591_v0 }
 0x37a   :  { %4341 = vmatpush3.bf16.msra.mxu0 %v5200_v28 }
 0x37b   :  { %4342 = vmatprep.subr.bf16.mxu0 %v4591_v0 }
 0x37e   :  { %4344 = vmatpush3.bf16.msra.mxu0 %v5309_v51 }
 0x37f   :  { %4345 = vmatprep.subr.bf16.mxu0 %v4591_v0 }
 0x382   :  { %4347 = vmatpush3.bf16.msra.mxu0 %v5319_v1 }
 0x383   :  { %4348 = vmatprep.subr.bf16.mxu0 %v4591_v0 }
 0x386   :  { %4350 = vmatpush3.bf16.msra.mxu0 %v5331_v50 }
 0x387   :  { %4351 = vmatprep.subr.bf16.mxu0 %v4591_v0 }
 0x389   :  { %3685 = vmatmul.mubr.f32.vlgmr.msra.gmra.mrb[2].mxu0 %v1445_v36  ;;  %v5926_v36 = vand.u32 4294901760, %v5178_v57  ;;  %v5932_v57 = vand.u32 4294901760, %v5350_v37  ;;  %v2071_v37 = vand.u32 4294901760, %v2718_v18 }
 0x38a   :  { %4353 = vmatpush3.bf16.msra.mxu0 %v4352_v32  ;;  %3719 = vmatprep.mubr.msk.f32.mxu0 %vm4592_vm0, %v4593_v4 }
 0x38b   :  { %4354 = vmatprep.subr.bf16.mxu0 %v4591_v0  ;;  %v4364_v48 = vpack.c.bf16 %v5926_v36, %v5925_v46  ;;  %v4373_v33 = vpack.c.bf16 %v5932_v57, %v5931_v11  ;;  %v5661_v34 = vpack.c.bf16 %v2071_v37, %v2068_v26  ;;  %v5680_v32 = vsub.f32 %v2718_v18, %v2071_v37 }
 0x38c   :  { %v2154_v46 = vand.u32 4294901760, %v5501_v29  ;;  %v2135_v36 = vand.u32 4294901760, %v2134_v6  ;;  %v2168_v11 = vand.u32 4294901760, %v5507_v31 }
 0x38e   :  { %4356 = vmatpush3.bf16.msra.mxu0 %v4355_v20  ;;  %v2128_v20 = vand.u32 4294901760, %v2127_v5  ;;  %v2155_v42 = vsub.f32 %v5501_v29, %v2154_v46 }
 0x38f   :  { %4357 = vmatprep.subr.bf16.mxu0 %v4591_v0 }
 0x390   :  { %v2156_v3 = vand.u32 4294901760, %v2155_v42 }
 0x392   :  { %4359 = vmatpush3.bf16.msra.mxu0 %v4358_v10 }
 0x393   :  { %4360 = vmatprep.subr.bf16.mxu0 %v4591_v0 }
 0x396   :  { %4362 = vmatpush3.bf16.msra.mxu0 %v4361_v15  ;;  %v2147_v15 = vand.u32 4294901760, %v5495_v47 }
 0x397   :  { %4363 = vmatprep.subr.bf16.mxu0 %v4591_v0 }
 0x398   :  { %v2148_v9 = vsub.f32 %v5495_v47, %v2147_v15 }
 0x39a   :  { %4365 = vmatpush3.bf16.msra.mxu0 %v4364_v48  ;;  %v2142_v48 = vand.u32 4294901760, %v2141_v27  ;;  %v2149_v60 = vand.u32 4294901760, %v2148_v9 }
 0x39b   :  { %4366 = vmatprep.subr.bf16.mxu0 %v4591_v0 }
 0x39c   :  { %v4430_v57 = vpack.c.bf16 %v2156_v3, %v2149_v60 }
 0x39e   :  { %4368 = vmatpush3.bf16.msra.mxu0 %v4367_v43  ;;  %v4427_v43 = vpack.c.bf16 %v2142_v48, %v2135_v36 }
 0x39f   :  { %4369 = vmatprep.subr.bf16.mxu0 %v4591_v0 }
 0x3a2   :  { %4371 = vmatpush3.bf16.msra.mxu0 %v4370_v44  ;;  %v2161_v44 = vand.u32 4294901760, %v5505_v35 }
 0x3a3   :  { %4372 = vmatprep.subr.bf16.mxu0 %v4591_v0 }
 0x3a6   :  { %4374 = vmatpush3.bf16.msra.mxu0 %v4373_v33  ;;  %v2162_v33 = vsub.f32 %v5505_v35, %v2161_v44 }
 0x3a7   :  { %4375 = vmatprep.subr.bf16.mxu0 %v4591_v0 }
 0x3a9   :  { %3720 = vmatmul.mubr.f32.vlgmr.msra.gmra.mrb[2].mxu0 %v5429_v61 }
 0x3aa   :  { %4377 = vmatpush3.bf16.msra.mxu0 %v5147_v12  ;;  %3754 = vmatprep.mubr.msk.f32.mxu0 %vm4592_vm0, %v4593_v4  ;;  %v2714_v12 = vld [vmem:[%s5870_s1 + $0x1d8] sm:$0xff] }
 0x3ab   :  { %4378 = vmatprep.subr.bf16.mxu0 %v4591_v0 }
 0x3ae   :  { %4380 = vmatpush3.bf16.msra.mxu0 %v5158_v41  ;;  %v2713_v41 = vld [vmem:[%s5870_s1 + $0x1d0] sm:$0xff] }
 0x3af   :  { %4381 = vmatprep.subr.bf16.mxu0 %v4591_v0 }
 0x3b2   :  { %4383 = vmatpush3.bf16.msra.mxu0 %v5184_v58  ;;  %v2056_v58 = vand.u32 4294901760, %v2713_v41 }
 0x3b3   :  { %4384 = vmatprep.subr.bf16.mxu0 %v4591_v0 }
 0x3b4   :  { %v5669_v62 = vsub.f32 %v2713_v41, %v2056_v58  ;;  %v2169_v41 = vsub.f32 %v5507_v31, %v2168_v11 }
 0x3b6   :  { %4386 = vmatpush3.bf16.msra.mxu0 %v5192_v22  ;;  %v2059_v22 = vand.u32 4294901760, %v2714_v12  ;;  %v5905_v26 = vand.u32 4294901760, %v5669_v62 }
 0x3b7   :  { %4387 = vmatprep.subr.bf16.mxu0 %v4591_v0 }
 0x3b8   :  { %v5671_v40 = vsub.f32 %v2714_v12, %v2059_v22  ;;  %v2163_v12 = vand.u32 4294901760, %v2162_v33  ;;  %v2190_v5 = vsub.f32 %v5669_v62, %v5905_v26  ;;  %v5901_v33 = vand.u32 4294901760, %v5678_v59 }
 0x3ba   :  { %4389 = vmatpush3.bf16.msra.mxu0 %v5200_v28  ;;  %v5639_v28 = vpack.c.bf16 %v2059_v22, %v2056_v58  ;;  %v2170_v58 = vand.u32 4294901760, %v2169_v41  ;;  %v2175_v22 = vand.u32 4294901760, %v5509_v30  ;;  %v5904_v37 = vand.u32 4294901760, %v5671_v40 }
 0x3bb   :  { %4390 = vmatprep.subr.bf16.mxu0 %v4591_v0  ;;  %v5900_v41 = vand.u32 4294901760, %v5680_v32 }
 0x3bc   :  { %4416 = vmatpush3.bf16.msra.mxu1 %v5639_v28 }
 0x3bd   :  { %4417 = vmatprep.subr.bf16.mxu1 %v4591_v0 }
 0x3be   :  { %4392 = vmatpush3.bf16.msra.mxu0 %v5309_v51  ;;  %v2715_v51 = vld [vmem:[%s5870_s1 + $0x1e0] sm:$0xff] }
 0x3bf   :  { %4393 = vmatprep.subr.bf16.mxu0 %v4591_v0 }
 0x3c2   :  { %4395 = vmatpush3.bf16.msra.mxu0 %v5319_v1  ;;  %v2716_v1 = vld [vmem:[%s5870_s1 + $0x1e8] sm:$0xff] }
 0x3c3   :  { %4396 = vmatprep.subr.bf16.mxu0 %v4591_v0  ;;  %v2065_v52 = vand.u32 4294901760, %v2716_v1 }
 0x3c5   :  { %v5675_v38 = vsub.f32 %v2716_v1, %v2065_v52  ;;  %v4433_v1 = vpack.c.bf16 %v2170_v58, %v2163_v12  ;;  %v2218_v58 = vsub.f32 %v5678_v59, %v5901_v33 }
 0x3c6   :  { %4398 = vmatpush3.bf16.msra.mxu0 %v5331_v50  ;;  %v2062_v50 = vand.u32 4294901760, %v2715_v51 }
 0x3c7   :  { %v5902_v36 = vand.u32 4294901760, %v5675_v38 }
 0x3c8   :  { %v5649_v17 = vpack.c.bf16 %v2065_v52, %v2062_v50  ;;  %v5673_v23 = vsub.f32 %v2715_v51, %v2062_v50  ;;  %v5906_v51 = vand.u32 4294901760, %v5511_v16  ;;  %v2176_v50 = vsub.f32 %v5509_v30, %v2175_v22 }
 0x3c9   :  { %3755 = vmatmul.mubr.f32.vlgmr.msra.gmra.mrb[2].mxu0 %v5429_v61  ;;  %v2119_v61 = vand.u32 4294901760, %v5482_v2  ;;  %v2211_v42 = vsub.f32 %v5675_v38, %v5902_v36 }
 0x3ca   :  { %4419 = vmatpush3.bf16.msra.mxu1 %v5649_v17  ;;  %v2183_v52 = vsub.f32 %v5511_v16, %v5906_v51  ;;  %v2177_v24 = vand.u32 4294901760, %v2176_v50  ;;  %v5903_v27 = vand.u32 4294901760, %v5673_v23  ;;  %v2225_v50 = vsub.f32 %v5680_v32, %v5900_v41 }
 0x3cb   :  { %4420 = vmatprep.subr.bf16.mxu1 %v4591_v0  ;;  %v2120_v55 = vsub.f32 %v5482_v2, %v2119_v61  ;;  %v2212_v3 = vand.u32 4294901760, %v2211_v42  ;;  %v4463_v42 = vpack.c.bf16 %v5671_v40, %v5669_v62 }
 0x3cc   :  { %v2184_v18 = vand.u32 4294901760, %v2183_v52  ;;  %v2204_v9 = vsub.f32 %v5673_v23, %v5903_v27  ;;  %v2219_v52 = vand.u32 4294901760, %v2218_v58  ;;  %v1360_v58 = vsub.s32 2, %v5086_v21 }
 0x3cd   :  { %v2121_v19 = vand.u32 4294901760, %v2120_v55 }
 0x3ce   :  { %4422 = vmatpush3.bf16.msra.mxu1 %v5661_v34  ;;  %v4436_v55 = vpack.c.bf16 %v2184_v18, %v2177_v24  ;;  %v2205_v60 = vand.u32 4294901760, %v2204_v9  ;;  %v2226_v24 = vand.u32 4294901760, %v2225_v50  ;;  %v4460_v9 = vpack.c.bf16 %v5511_v16, %v5509_v30 }
 0x3cf   :  { %4423 = vmatprep.subr.bf16.mxu1 %v4591_v0  ;;  %v5685_v10 = vpack.c.bf16 %v2128_v20, %v2121_v19  ;;  %v2197_v19 = vsub.f32 %v5671_v40, %v5904_v37  ;;  %v2191_v20 = vand.u32 4294901760, %v2190_v5  ;;  %v4448_v5 = vpack.c.bf16 %v5484_v25, %v5482_v2 }
 0x3d0   :  { %v4442_v12 = vpack.c.bf16 %v2212_v3, %v2205_v60  ;;  %v4445_v18 = vpack.c.bf16 %v2226_v24, %v2219_v52  ;;  %v4466_v60 = vpack.c.bf16 %v5675_v38, %v5673_v23  ;;  %v4469_v3 = vpack.c.bf16 %v5680_v32, %v5678_v59 }
 0x3d1   :  { %v2198_v6 = vand.u32 4294901760, %v2197_v19  ;;  %v4451_v19 = vpack.c.bf16 %v5493_v56, %v5486_v14  ;;  %v1361_v50 = vrot.slane %v5092_v54, %v1360_v58  ;;  %v4496_v54 = vpack.c.bf16 %v2126_v53, %v2119_v61 }
 0x3d2   :  { %v4502_v25 = vpack.c.bf16 %v2154_v46, %v2147_v15  ;;  %v4505_v56 = vpack.c.bf16 %v2168_v11, %v2161_v44  ;;  %v5933_v14 = vand.u32 4294901760, %v5511_v16  ;;  %v5938_v30 = vand.u32 4294901760, %v5678_v59 }
 0x3d3   :  { %v4439_v48 = vpack.c.bf16 %v2198_v6, %v2191_v20  ;;  %v4454_v20 = vpack.c.bf16 %v5501_v29, %v5495_v47  ;;  %v4457_v6 = vpack.c.bf16 %v5507_v31, %v5505_v35  ;;  %v5934_v47 = vand.u32 4294901760, %v5669_v62 }
 0x3d4   :  { %v4508_v2 = vpack.c.bf16 %v5933_v14, %v2175_v22  ;;  %v5935_v29 = vand.u32 4294901760, %v5671_v40  ;;  %v5936_v35 = vand.u32 4294901760, %v5673_v23  ;;  %v5937_v31 = vand.u32 4294901760, %v5675_v38 }
 0x3d5   :  { %v5939_v16 = vand.u32 4294901760, %v5680_v32 }
 0x3d6   :  { %v4511_v61 = vpack.c.bf16 %v5935_v29, %v5934_v47  ;;  %v4514_v53 = vpack.c.bf16 %v5937_v31, %v5936_v35 }
 0x49c   :  { %v1999_v52 = vpop.f32.mrb[2].mxu0 }
 0x49d   :  { %v4545_v24 = vadd.f32 %v1999_v52, %v1361_v50  ;;  %v3756_v41 = vpop.f32.mrb[3].mxu0 }
 0x49f   :  { %v2003_v33 = vmax.f32 %v4545_v24, 0.0 }
 0x4a1   :  { %v5759_v36 = vand.u32 4294901760, %v2003_v33 }
 0x4a3   :  { %v2107_v27 = vsub.f32 %v2003_v33, %v5759_v36 }
 0x4a5   :  { %v2108_v37 = vand.u32 4294901760, %v2107_v27 }
 0x4a7   :  { %v2109_v26 = vsub.f32 %v2107_v27, %v2108_v37 }
 0x4a9   :  { %v2110_v51 = vand.u32 4294901760, %v2109_v26 }
 0x4ab   :  { %3790 = vmatmul.mubr.f32.vlgmr.msra.gmra.mrb[2].mxu1 %v2110_v51 }
 0x4ac   :  { %4425 = vmatpush3.bf16.msra.mxu1 %v5685_v10  ;;  %3824 = vmatprep.mubr.msk.f32.mxu1 %vm4592_vm0, %v4593_v4  ;;  %v4499_v10 = vpack.c.bf16 %v2140_v45, %v2133_v13  ;;  %v4517_v13 = vpack.c.bf16 %v5939_v16, %v5938_v30 }
 0x4ad   :  { %4426 = vmatprep.subr.bf16.mxu1 %v4591_v0 }
 0x4b0   :  { %4428 = vmatpush3.bf16.msra.mxu1 %v4427_v43 }
 0x4b1   :  { %4429 = vmatprep.subr.bf16.mxu1 %v4591_v0 }
 0x4b4   :  { %4431 = vmatpush3.bf16.msra.mxu1 %v4430_v57 }
 0x4b5   :  { %4432 = vmatprep.subr.bf16.mxu1 %v4591_v0 }
 0x4b8   :  { %4434 = vmatpush3.bf16.msra.mxu1 %v4433_v1 }
 0x4b9   :  { %4435 = vmatprep.subr.bf16.mxu1 %v4591_v0 }
 0x4bc   :  { %4437 = vmatpush3.bf16.msra.mxu1 %v4436_v55 }
 0x4bd   :  { %4438 = vmatprep.subr.bf16.mxu1 %v4591_v0 }
 0x4c0   :  { %4440 = vmatpush3.bf16.msra.mxu1 %v4439_v48 }
 0x4c1   :  { %4441 = vmatprep.subr.bf16.mxu1 %v4591_v0 }
 0x4c4   :  { %4443 = vmatpush3.bf16.msra.mxu1 %v4442_v12 }
 0x4c5   :  { %4444 = vmatprep.subr.bf16.mxu1 %v4591_v0 }
 0x4c8   :  { %4446 = vmatpush3.bf16.msra.mxu1 %v4445_v18 }
 0x4c9   :  { %4447 = vmatprep.subr.bf16.mxu1 %v4591_v0 }
 0x4cb   :  { %3825 = vmatmul.mubr.f32.vlgmr.msra.gmra.mrb[2].mxu1 %v5759_v36 }
 0x4cc   :  { %4449 = vmatpush3.bf16.msra.mxu1 %v4448_v5  ;;  %3859 = vmatprep.mubr.msk.f32.mxu1 %vm4592_vm0, %v4593_v4 }
 0x4cd   :  { %4450 = vmatprep.subr.bf16.mxu1 %v4591_v0 }
 0x4d0   :  { %4452 = vmatpush3.bf16.msra.mxu1 %v4451_v19 }
 0x4d1   :  { %4453 = vmatprep.subr.bf16.mxu1 %v4591_v0 }
 0x4d4   :  { %4455 = vmatpush3.bf16.msra.mxu1 %v4454_v20 }
 0x4d5   :  { %4456 = vmatprep.subr.bf16.mxu1 %v4591_v0 }
 0x4d8   :  { %4458 = vmatpush3.bf16.msra.mxu1 %v4457_v6 }
 0x4d9   :  { %4459 = vmatprep.subr.bf16.mxu1 %v4591_v0 }
 0x4dc   :  { %4461 = vmatpush3.bf16.msra.mxu1 %v4460_v9 }
 0x4dd   :  { %4462 = vmatprep.subr.bf16.mxu1 %v4591_v0 }
 0x4e0   :  { %4464 = vmatpush3.bf16.msra.mxu1 %v4463_v42 }
 0x4e1   :  { %4465 = vmatprep.subr.bf16.mxu1 %v4591_v0 }
 0x4e4   :  { %4467 = vmatpush3.bf16.msra.mxu1 %v4466_v60 }
 0x4e5   :  { %4468 = vmatprep.subr.bf16.mxu1 %v4591_v0 }
 0x4e8   :  { %4470 = vmatpush3.bf16.msra.mxu1 %v4469_v3 }
 0x4e9   :  { %4471 = vmatprep.subr.bf16.mxu1 %v4591_v0 }
 0x4eb   :  { %3860 = vmatmul.mubr.f32.vlgmr.msra.gmra.mrb[2].mxu1 %v2107_v27 }
 0x4ec   :  { %4473 = vmatpush3.bf16.msra.mxu1 %v5480_v63  ;;  %3894 = vmatprep.mubr.msk.f32.mxu1 %vm4592_vm0, %v4593_v4 }
 0x4ed   :  { %4474 = vmatprep.subr.bf16.mxu1 %v4591_v0 }
 0x4f0   :  { %4476 = vmatpush3.bf16.msra.mxu1 %v5491_v8 }
 0x4f1   :  { %4477 = vmatprep.subr.bf16.mxu1 %v4591_v0 }
 0x4f4   :  { %4479 = vmatpush3.bf16.msra.mxu1 %v5517_v39 }
 0x4f5   :  { %4480 = vmatprep.subr.bf16.mxu1 %v4591_v0 }
 0x4f8   :  { %4482 = vmatpush3.bf16.msra.mxu1 %v5525_v49 }
 0x4f9   :  { %4483 = vmatprep.subr.bf16.mxu1 %v4591_v0 }
 0x4fc   :  { %4485 = vmatpush3.bf16.msra.mxu1 %v5533_v7 }
 0x4fd   :  { %4486 = vmatprep.subr.bf16.mxu1 %v4591_v0 }
 0x500   :  { %4488 = vmatpush3.bf16.msra.mxu1 %v5639_v28 }
 0x501   :  { %4489 = vmatprep.subr.bf16.mxu1 %v4591_v0 }
 0x504   :  { %4491 = vmatpush3.bf16.msra.mxu1 %v5649_v17 }
 0x505   :  { %4492 = vmatprep.subr.bf16.mxu1 %v4591_v0 }
 0x508   :  { %4494 = vmatpush3.bf16.msra.mxu1 %v5661_v34 }
 0x509   :  { %4495 = vmatprep.subr.bf16.mxu1 %v4591_v0 }
 0x50b   :  { %3895 = vmatmul.mubr.f32.vlgmr.msra.gmra.mrb[2].mxu1 %v2108_v37 }
 0x50c   :  { %4497 = vmatpush3.bf16.msra.mxu1 %v4496_v54  ;;  %3929 = vmatprep.mubr.msk.f32.mxu1 %vm4592_vm0, %v4593_v4 }
 0x50d   :  { %4498 = vmatprep.subr.bf16.mxu1 %v4591_v0 }
 0x510   :  { %4500 = vmatpush3.bf16.msra.mxu1 %v4499_v10 }
 0x511   :  { %4501 = vmatprep.subr.bf16.mxu1 %v4591_v0 }
 0x514   :  { %4503 = vmatpush3.bf16.msra.mxu1 %v4502_v25 }
 0x515   :  { %4504 = vmatprep.subr.bf16.mxu1 %v4591_v0 }
 0x518   :  { %4506 = vmatpush3.bf16.msra.mxu1 %v4505_v56 }
 0x519   :  { %4507 = vmatprep.subr.bf16.mxu1 %v4591_v0 }
 0x51c   :  { %4509 = vmatpush3.bf16.msra.mxu1 %v4508_v2 }
 0x51d   :  { %4510 = vmatprep.subr.bf16.mxu1 %v4591_v0 }
 0x520   :  { %4512 = vmatpush3.bf16.msra.mxu1 %v4511_v61 }
 0x521   :  { %4513 = vmatprep.subr.bf16.mxu1 %v4591_v0 }
 0x524   :  { %4515 = vmatpush3.bf16.msra.mxu1 %v4514_v53 }
 0x525   :  { %4516 = vmatprep.subr.bf16.mxu1 %v4591_v0 }
 0x528   :  { %4518 = vmatpush3.bf16.msra.mxu1 %v4517_v13 }
 0x529   :  { %4519 = vmatprep.subr.bf16.mxu1 %v4591_v0 }
 0x52b   :  { %3930 = vmatmul.mubr.f32.vlgmr.msra.gmra.mrb[2].mxu1 %v5759_v36 }
 0x52c   :  { %4521 = vmatpush3.bf16.msra.mxu1 %v5480_v63  ;;  %3964 = vmatprep.mubr.msk.f32.mxu1 %vm4592_vm0, %v4593_v4  ;;  %v2023_v4 = vsub.s32 3, %v5086_v21 }
 0x52d   :  { %4522 = vmatprep.subr.bf16.mxu1 %v4591_v0 }
 0x530   :  { %4524 = vmatpush3.bf16.msra.mxu1 %v5491_v8  ;;  %v4590_v8 = vld [vmem:[%s5872_s2] sm:$0xff] }
 0x531   :  { %4525 = vmatprep.subr.bf16.mxu1 %v4591_v0  ;;  %v2024_v63 = vrot.slane %v4590_v8, %v2023_v4 }
 0x534   :  { %4527 = vmatpush3.bf16.msra.mxu1 %v5517_v39 }
 0x535   :  { %4528 = vmatprep.subr.bf16.mxu1 %v4591_v0 }
 0x538   :  { %4530 = vmatpush3.bf16.msra.mxu1 %v5525_v49 }
 0x539   :  { %4531 = vmatprep.subr.bf16.mxu1 %v4591_v0 }
 0x53c   :  { %4533 = vmatpush3.bf16.msra.mxu1 %v5533_v7 }
 0x53d   :  { %4534 = vmatprep.subr.bf16.mxu1 %v4591_v0 }
 0x540   :  { %4536 = vmatpush3.bf16.msra.mxu1 %v5639_v28 }
 0x541   :  { %4537 = vmatprep.subr.bf16.mxu1 %v4591_v0 }
 0x544   :  { %4539 = vmatpush3.bf16.msra.mxu1 %v5649_v17 }
 0x545   :  { %4540 = vmatprep.subr.bf16.mxu1 %v4591_v0 }
 0x548   :  { %4542 = vmatpush3.bf16.msra.mxu1 %v5661_v34 }
 0x54b   :  { %3965 = vmatmul.mubr.f32.vlgmr.msra.gmra.mrb[2].mxu1 %v5759_v36 }
 0x61e   :  { %v2662_v39 = vpop.f32.mrb[2].mxu1 }
 0x61f   :  { %v4546_v49 = vadd.f32 %v2662_v39, %v2024_v63  ;;  %v3966_v7 = vpop.f32.mrb[3].mxu1 }
 0x621   :  { %2666 = vst [vmem:[%s5873_s3] sm:$0xff] %v4546_v49 }

</bundles_post_ra>
